<compile_context>
chip_gen: v7x
topology: tpu7x:2x2x1
jax: 0.10.0
libtpu: 0.0.40
codegen_flags: <defaults>
</compile_context>

<pallas_src>
import functools

import jax
import jax.numpy as jnp
from jax.experimental import pallas as pl
from jax.experimental.pallas import tpu as pltpu

EPS = 1e-5
_VMEM_LIMIT = 64 * 1024 * 1024   # scoped-VMEM budget (v5e default is only 16 MiB)


def _conv_pass_kernel(xl_ref, xc_ref, xr_ref, ml_ref, mc_ref, mr_ref,
                      w_ref, scale_ref, shift_ref, y_ref, stats_ref,
                      *, halo, Wp, B, C, c_pad, pre_relu, conv_dtype):
    """3x3 'same' conv over one lane-block of flattened padded pixels.

    Layout: channels on sublanes, pixels on lanes (lane-dense).
      xl/xr    : (C, 128) left / right halo lane-blocks (clamped at grid edges;
                 clamped values only ever feed padding pixels that are masked).
      xc       : (C, B) centre pixel block.
      ml/mc/mr : matching interior-pixel mask blocks.
      w_ref    : (9, Cout, Cin) per-tap weights, tap = (dy+1)*3 + (dx+1).
      scale/shift : (C, 1) folded affine of the *previous* BatchNorm (pass 2).
      y_ref    : (C, B) pre-BatchNorm conv output, zeroed at padding pixels.
      stats_ref: (1, 2*c_pad, 128) lane-dense partials: rows [0:C] = sum band,
                 rows [c_pad:c_pad+C] = sum-of-squares band, rest zero.
    """
    # Aligned halo window: 128 + B + 128 lanes, every concat piece is a
    # multiple of 128 lanes -> single cheap aligned copy.
    win = jnp.concatenate([xl_ref[...], xc_ref[...], xr_ref[...]], axis=1)
    if pre_relu:
        # BN1 affine + ReLU + interior mask recomputed on the haloed window so
        # conv2 sees exact zero padding (also neutralises clamped edge halos).
        mwin = jnp.concatenate([ml_ref[...], mc_ref[...], mr_ref[...]], axis=1)
        win = jnp.where(mwin > 0.0,
                        jnp.maximum(scale_ref[...] * win + shift_ref[...], 0.0),
                        0.0)
    win = win.astype(conv_dtype)

    # 9 accumulated K=C MXU dots on lane-shifted views (no (9C,B) slab).
    # TODO(synk): pltpu.roll on the lane axis would make the shifted views
    # alignment-free (XLU slot) instead of unaligned value slices.
    offs = tuple(dy * Wp + dx for dy in (-1, 0, 1) for dx in (-1, 0, 1))
    acc = None
    for t, o in enumerate(offs):
        view = win[:, 128 + o: 128 + o + B]
        part = jnp.dot(w_ref[t], view, preferred_element_type=jnp.float32)
        acc = part if acc is None else acc + part

    y = acc * mc_ref[...]            # zero at padding / alignment-pad pixels
    y_ref[...] = y.astype(y_ref.dtype)

    # Lane-dense partial BatchNorm statistics: accumulate aligned 128-lane
    # column slices with VPU adds; final cross-lane reduce done outside.
    ncols = B // 128
    col = y[:, :128]
    ssum = col
    ssq = col * col
    for j in range(1, ncols):
        col = y[:, j * 128:(j + 1) * 128]
        ssum = ssum + col
        ssq = ssq + col * col
    if c_pad > C:
        zpad = jnp.zeros((c_pad - C, 128), jnp.float32)
        stats = jnp.concatenate([ssum, zpad, ssq, zpad], axis=0)
    else:
        stats = jnp.concatenate([ssum, ssq], axis=0)
    stats_ref[0] = stats


def _bn_residual_relu_kernel(y_ref, x_ref, scale_ref, shift_ref, o_ref):
    """out = relu(BN2(conv2) + residual): purely elementwise, lane-dense."""
    o_ref[...] = jnp.maximum(
        scale_ref[...] * y_ref[...] + shift_ref[...] + x_ref[...], 0.0)


def _conv_bn_stats_pass(src, mask, w_taps, scale, shift, *, Wp, block_pixels,
                        pre_relu, conv_dtype):
    C, P = src.shape
    B = block_pixels
    nblk = P // B
    bpb = B // 128                      # 128-lane blocks per pixel block
    n128 = nblk * bpb                   # total 128-lane blocks
    halo = Wp + 1
    c_pad = max(8, -(-C // 8) * 8)

    cent = lambda i: (0, i)
    left = lambda i: (0, jnp.maximum(i * bpb - 1, 0))            # 128-lane units
    right = lambda i: (0, jnp.minimum((i + 1) * bpb, n128 - 1))  # 128-lane units
    const2 = lambda i: (0, 0)
    const3 = lambda i: (0, 0, 0)

    kern = functools.partial(_conv_pass_kernel, halo=halo, Wp=Wp, B=B, C=C,
                             c_pad=c_pad, pre_relu=pre_relu,
                             conv_dtype=conv_dtype)
    y, stats = pl.pallas_call(
        kern,
        grid=(nblk,),
        in_specs=[
            pl.BlockSpec((C, 128), left),    # left halo (128 lanes only)
            pl.BlockSpec((C, B), cent),      # centre block
            pl.BlockSpec((C, 128), right),   # right halo (128 lanes only)
            pl.BlockSpec((1, 128), left),
            pl.BlockSpec((1, B), cent),
            pl.BlockSpec((1, 128), right),
            pl.BlockSpec((9, C, C), const3),
            pl.BlockSpec((C, 1), const2),
            pl.BlockSpec((C, 1), const2),
        ],
        out_specs=(
            pl.BlockSpec((C, B), cent),
            pl.BlockSpec((1, 2 * c_pad, 128), lambda i: (i, 0, 0)),
        ),
        out_shape=(
            jax.ShapeDtypeStruct((C, P), jnp.float32),
            jax.ShapeDtypeStruct((nblk, 2 * c_pad, 128), jnp.float32),
        ),
        compiler_params=pltpu.CompilerParams(
            dimension_semantics=("parallel",),   # shard pixel blocks over TCs
            vmem_limit_bytes=_VMEM_LIMIT),
    )(src, src, src, mask, mask, mask, w_taps, scale, shift)
    return y, stats, c_pad


def _bn_residual_relu_pass(y, x, scale, shift, *, block_pixels):
    C, P = y.shape
    B = block_pixels
    nblk = P // B
    cent = lambda i: (0, i)
    const = lambda i: (0, 0)
    return pl.pallas_call(
        _bn_residual_relu_kernel,
        grid=(nblk,),
        in_specs=[pl.BlockSpec((C, B), cent), pl.BlockSpec((C, B), cent),
                  pl.BlockSpec((C, 1), const), pl.BlockSpec((C, 1), const)],
        out_specs=pl.BlockSpec((C, B), cent),
        out_shape=jax.ShapeDtypeStruct((C, P), jnp.float32),
        compiler_params=pltpu.CompilerParams(
            dimension_semantics=("parallel",),
            vmem_limit_bytes=_VMEM_LIMIT),
    )(y, x, scale, shift)


def _bn_scale_shift(stats_partials, gamma, beta, count, c_pad):
    """Fold training-mode batch mean / biased var with gamma/beta into scale/shift."""
    c = gamma.shape[0]
    tot = jnp.sum(stats_partials, axis=0)             # (2*c_pad, 128)
    ssum = jnp.sum(tot[:c], axis=1)                    # finish 128-lane reduce
    ssq = jnp.sum(tot[c_pad:c_pad + c], axis=1)
    mean = ssum / count
    var = ssq / count - mean * mean                    # biased variance, f32
    scale = gamma * jax.lax.rsqrt(var + EPS)
    shift = beta - mean * scale
    return (scale.reshape(c, 1).astype(jnp.float32),
            shift.reshape(c, 1).astype(jnp.float32))


def resblock_forward(x_nchw, params, *, block_pixels=1024, use_bf16_mxu=False):
    """BasicBlock forward (training-mode BatchNorm), NCHW in / NCHW out.

    Three gridded pallas_calls (BatchNorm's global batch statistics force a
    barrier after each conv):
      pass 1: conv1             -> pre-BN activations + lane-dense (sum, sumsq)
      glue  : fold stats1 with (gamma1, beta1) into a per-channel affine
      pass 2: BN1+ReLU -> conv2 -> pre-BN activations + lane-dense (sum, sumsq)
      glue  : fold stats2 with (gamma2, beta2)
      pass 3: BN2 + residual + ReLU (elementwise, independently tiled)

    block_pixels is the conv-pass lane tile (multiple of 128); scale it down
    for very wide layers on v7x (64 MiB VMEM).  use_bf16_mxu casts weights and
    the conv window to bf16 (f32 accumulation / f32 BN stats) for ~2-3x MXU
    rate; it loosens parity beyond the 1e-3 gate, so it defaults off.
    """
    w1, g1, b1, w2, g2, b2 = params
    N, C, H, W = x_nchw.shape
    Hp, Wp = H + 2, W + 2
    assert block_pixels % 128 == 0, "block_pixels must be a multiple of 128"
    assert Wp + 1 <= 128, "image width too large for 128-lane halo blocks"
    Ntot = N * Hp * Wp
    B = min(block_pixels, -(-Ntot // 128) * 128)
    nblk = -(-Ntot // B)
    P = nblk * B

    f32 = jnp.float32
    conv_dtype = jnp.bfloat16 if use_bf16_mxu else f32

    # NCHW -> zero-pad spatially -> channels-major, flattened padded pixels on lanes.
    # TODO(synk): this layout plumbing (and the crop/transpose at the end) is
    # extra HBM traffic outside Pallas; production would keep the (C, P) layout
    # between blocks or have pass 3 write NCHW directly.
    xp = jnp.pad(x_nchw.astype(f32), ((0, 0), (0, 0), (1, 1), (1, 1)))
    xflat = jnp.transpose(xp, (1, 0, 2, 3)).reshape(C, Ntot)
    xflat = jnp.pad(xflat, ((0, 0), (0, P - Ntot)))

    # interior-pixel mask (1.0 where the flattened position is a real H*W pixel)
    idx = jnp.arange(Ntot)
    row = (idx // Wp) % Hp
    col = idx % Wp
    interior = ((row >= 1) & (row <= H) & (col >= 1) & (col <= W)).astype(f32)
    mask = jnp.pad(interior, (0, P - Ntot)).reshape(1, P)

    # OIHW -> (9, Cout, Cin): one weight matrix per tap, tap = (dy+1)*3 + (dx+1)
    w1t = jnp.transpose(w1, (2, 3, 0, 1)).reshape(9, C, C).astype(conv_dtype)
    w2t = jnp.transpose(w2, (2, 3, 0, 1)).reshape(9, C, C).astype(conv_dtype)

    count = jnp.asarray(N * H * W, f32)
    identity = jnp.ones((C, 1), f32)
    zero = jnp.zeros((C, 1), f32)

    y1, st1, c_pad = _conv_bn_stats_pass(xflat, mask, w1t, identity, zero,
                                         Wp=Wp, block_pixels=B, pre_relu=False,
                                         conv_dtype=conv_dtype)
    scale1, shift1 = _bn_scale_shift(st1, g1.astype(f32), b1.astype(f32), count, c_pad)

    y2, st2, _ = _conv_bn_stats_pass(y1, mask, w2t, scale1, shift1,
                                     Wp=Wp, block_pixels=B, pre_relu=True,
                                     conv_dtype=conv_dtype)
    scale2, shift2 = _bn_scale_shift(st2, g2.astype(f32), b2.astype(f32), count, c_pad)

    # Elementwise pass: no halo / slab, so take the largest tile dividing P.
    ew_b = B
    while ew_b * 2 <= 4096 and P % (ew_b * 2) == 0:
        ew_b *= 2
    out_flat = _bn_residual_relu_pass(y2, xflat, scale2, shift2, block_pixels=ew_b)

    # crop interior pixels and restore NCHW
    out = out_flat[:, :Ntot].reshape(C, N, Hp, Wp)[:, :, 1:H + 1, 1:W + 1]
    return jnp.transpose(out, (1, 0, 2, 3))


def resblock_reference(x, w1, g1, b1, w2, g2, b2):
    """Pure-JAX reference mirroring the PyTorch training-mode forward."""
    def conv(v, w):
        return jax.lax.conv_general_dilated(
            v, w, (1, 1), ((1, 1), (1, 1)),
            dimension_numbers=("NCHW", "OIHW", "NCHW"))

    def bn(v, g, b):
        mean = v.mean(axis=(0, 2, 3), keepdims=True)
        var = ((v - mean) ** 2).mean(axis=(0, 2, 3), keepdims=True)
        return ((v - mean) * jax.lax.rsqrt(var + EPS)
                * g.reshape(1, -1, 1, 1) + b.reshape(1, -1, 1, 1))

    h = jnp.maximum(bn(conv(x, w1), g1, b1), 0.0)
    return jnp.maximum(bn(conv(h, w2), g2, b2) + x, 0.0)


if __name__ == "__main__":
    key = jax.random.PRNGKey(0)
    kx, k1, k2, kg1, kb1, kg2, kb2 = jax.random.split(key, 7)
    N, C, H, W = 2, 4, 16, 16

    x = jax.random.normal(kx, (N, C, H, W), jnp.float32)
    w1 = jax.random.normal(k1, (C, C, 3, 3), jnp.float32) * 0.2
    w2 = jax.random.normal(k2, (C, C, 3, 3), jnp.float32) * 0.2
    g1 = 1.0 + 0.1 * jax.random.normal(kg1, (C,), jnp.float32)
    b1 = 0.1 * jax.random.normal(kb1, (C,), jnp.float32)
    g2 = 1.0 + 0.1 * jax.random.normal(kg2, (C,), jnp.float32)
    b2 = 0.1 * jax.random.normal(kb2, (C,), jnp.float32)
    params = (w1, g1, b1, w2, g2, b2)

    ref = jax.block_until_ready(resblock_reference(x, *params))

    # default tiling (single pixel block at this size)
    out = jax.block_until_ready(jax.jit(resblock_forward)(x, params))
    assert out.shape == (N, C, H, W), out.shape
    err = float(jnp.max(jnp.abs(out - ref)))
    if err > 1e-3:
        raise AssertionError(f"kernel/reference mismatch (default tiling), max abs err = {err}")

    # small-tile run exercising the multi-block (C,128) halo path
    out_small = jax.block_until_ready(
        jax.jit(functools.partial(resblock_forward, block_pixels=256))(x, params))
    err_small = float(jnp.max(jnp.abs(out_small - ref)))
    if err_small > 1e-3:
        raise AssertionError(f"kernel/reference mismatch (256 tiling), max abs err = {err_small}")

    print("KERNEL_OK")
</pallas_src>

<mosaic_0001>
module attributes {stable_mosaic.version = 11 : i64} {
  func.func @_bn_residual_relu_kernel(%arg0: i32, %arg1: memref<4x768xf32, #tpu.memory_space<vmem>>, %arg2: memref<4x768xf32, #tpu.memory_space<vmem>>, %arg3: memref<4x1xf32, #tpu.memory_space<vmem>>, %arg4: memref<4x1xf32, #tpu.memory_space<vmem>>, %arg5: memref<4x768xf32, #tpu.memory_space<vmem>>) attributes {dimension_semantics = [#tpu.dimension_semantics<parallel>], iteration_bounds = array<i64: 1>, scalar_prefetch = 0 : i64, scratch_operands = 0 : i64, tpu.core_type = #tpu.core_type<tc>, window_params = [{transform_indices = @transform_0, window_bounds = array<i64: 4, 768>}, {transform_indices = @transform_1, window_bounds = array<i64: 4, 768>}, {pipeline_mode = #tpu.pipeline_mode<synchronous>, transform_indices = @transform_2, window_bounds = array<i64: 4, 1>}, {pipeline_mode = #tpu.pipeline_mode<synchronous>, transform_indices = @transform_3, window_bounds = array<i64: 4, 1>}, {transform_indices = @transform_4, window_bounds = array<i64: 4, 768>}]} {
    %c0 = arith.constant 0 : index
    %c0_0 = arith.constant 0 : index
    %0 = vector.load %arg3[%c0, %c0_0] : memref<4x1xf32, #tpu.memory_space<vmem>>, vector<4x1xf32>
    %c0_1 = arith.constant 0 : index
    %c0_2 = arith.constant 0 : index
    %1 = vector.load %arg1[%c0_1, %c0_2] : memref<4x768xf32, #tpu.memory_space<vmem>>, vector<4x768xf32>
    %2 = vector.broadcast %0 : vector<4x1xf32> to vector<4x768xf32>
    %3 = arith.mulf %2, %1 : vector<4x768xf32>
    %c0_3 = arith.constant 0 : index
    %c0_4 = arith.constant 0 : index
    %4 = vector.load %arg4[%c0_3, %c0_4] : memref<4x1xf32, #tpu.memory_space<vmem>>, vector<4x1xf32>
    %5 = vector.broadcast %4 : vector<4x1xf32> to vector<4x768xf32>
    %6 = arith.addf %3, %5 : vector<4x768xf32>
    %c0_5 = arith.constant 0 : index
    %c0_6 = arith.constant 0 : index
    %7 = vector.load %arg2[%c0_5, %c0_6] : memref<4x768xf32, #tpu.memory_space<vmem>>, vector<4x768xf32>
    %8 = arith.addf %6, %7 : vector<4x768xf32>
    %cst = arith.constant 0.000000e+00 : f32
    %9 = vector.broadcast %cst : f32 to vector<4x768xf32>
    %10 = arith.maximumf %8, %9 : vector<4x768xf32>
    %c0_7 = arith.constant 0 : index
    %c0_8 = arith.constant 0 : index
    %11 = vector.load %arg5[%c0_7, %c0_8] : memref<4x768xf32, #tpu.memory_space<vmem>>, vector<4x768xf32>
    tpu.vector_store %arg5[%c0_7, %c0_8], %10 {strides = array<i32>} : memref<4x768xf32, #tpu.memory_space<vmem>>, vector<4x768xf32>,
    return
  }
  func.func @transform_0(%arg0: i32) -> (i32, i32) {
    %c0_i32 = arith.constant 0 : i32
    %c0_i32_0 = arith.constant 0 : i32
    return %c0_i32, %arg0 : i32, i32
  }
  func.func @transform_1(%arg0: i32) -> (i32, i32) {
    %c0_i32 = arith.constant 0 : i32
    %c0_i32_0 = arith.constant 0 : i32
    return %c0_i32, %arg0 : i32, i32
  }
  func.func @transform_2(%arg0: i32) -> (i32, i32) {
    %c0_i32 = arith.constant 0 : i32
    %c0_i32_0 = arith.constant 0 : i32
    %c0_i32_1 = arith.constant 0 : i32
    return %c0_i32, %c0_i32_0 : i32, i32
  }
  func.func @transform_3(%arg0: i32) -> (i32, i32) {
    %c0_i32 = arith.constant 0 : i32
    %c0_i32_0 = arith.constant 0 : i32
    %c0_i32_1 = arith.constant 0 : i32
    return %c0_i32, %c0_i32_0 : i32, i32
  }
  func.func @transform_4(%arg0: i32) -> (i32, i32) {
    %c0_i32 = arith.constant 0 : i32
    %c0_i32_0 = arith.constant 0 : i32
    return %c0_i32, %arg0 : i32, i32
  }
}

module attributes {stable_mosaic.version = 11 : i64} {
  func.func @_conv_pass_kernel(%arg0: i32, %arg1: memref<4x128xf32, #tpu.memory_space<vmem>>, %arg2: memref<4x768xf32, #tpu.memory_space<vmem>>, %arg3: memref<4x128xf32, #tpu.memory_space<vmem>>, %arg4: memref<1x128xf32, #tpu.memory_space<vmem>>, %arg5: memref<1x768xf32, #tpu.memory_space<vmem>>, %arg6: memref<1x128xf32, #tpu.memory_space<vmem>>, %arg7: memref<9x4x4xf32, #tpu.memory_space<vmem>>, %arg8: memref<4x1xf32, #tpu.memory_space<vmem>>, %arg9: memref<4x1xf32, #tpu.memory_space<vmem>>, %arg10: memref<4x768xf32, #tpu.memory_space<vmem>>, %arg11: memref<1x16x128xf32, #tpu.memory_space<vmem>>) attributes {dimension_semantics = [#tpu.dimension_semantics<parallel>], iteration_bounds = array<i64: 1>, scalar_prefetch = 0 : i64, scratch_operands = 0 : i64, tpu.core_type = #tpu.core_type<tc>, window_params = [{transform_indices = @transform_0, window_bounds = array<i64: 4, 128>}, {transform_indices = @transform_1, window_bounds = array<i64: 4, 768>}, {transform_indices = @transform_2, window_bounds = array<i64: 4, 128>}, {transform_indices = @transform_3, window_bounds = array<i64: 1, 128>}, {transform_indices = @transform_4, window_bounds = array<i64: 1, 768>}, {transform_indices = @transform_5, window_bounds = array<i64: 1, 128>}, {pipeline_mode = #tpu.pipeline_mode<synchronous>, transform_indices = @transform_6, window_bounds = array<i64: 9, 4, 4>}, {pipeline_mode = #tpu.pipeline_mode<synchronous>, transform_indices = @transform_7, window_bounds = array<i64: 4, 1>}, {pipeline_mode = #tpu.pipeline_mode<synchronous>, transform_indices = @transform_8, window_bounds = array<i64: 4, 1>}, {transform_indices = @transform_9, window_bounds = array<i64: 4, 768>}, {transform_indices = @transform_10, window_bounds = array<i64: 1, 16, 128>}]} {
    %c0 = arith.constant 0 : index
    %c0_0 = arith.constant 0 : index
    %0 = vector.load %arg1[%c0, %c0_0] : memref<4x128xf32, #tpu.memory_space<vmem>>, vector<4x128xf32>
    %c0_1 = arith.constant 0 : index
    %c0_2 = arith.constant 0 : index
    %1 = vector.load %arg2[%c0_1, %c0_2] : memref<4x768xf32, #tpu.memory_space<vmem>>, vector<4x768xf32>
    %c0_3 = arith.constant 0 : index
    %c0_4 = arith.constant 0 : index
    %2 = vector.load %arg3[%c0_3, %c0_4] : memref<4x128xf32, #tpu.memory_space<vmem>>, vector<4x128xf32>
    %3 = tpu.concatenate %0, %1, %2 in 1 : vector<4x128xf32>, vector<4x768xf32>, vector<4x128xf32> -> vector<4x1024xf32>
    %c0_5 = arith.constant 0 : index
    %c0_6 = arith.constant 0 : index
    %4 = vector.load %arg4[%c0_5, %c0_6] : memref<1x128xf32, #tpu.memory_space<vmem>>, vector<1x128xf32>
    %c0_7 = arith.constant 0 : index
    %c0_8 = arith.constant 0 : index
    %5 = vector.load %arg5[%c0_7, %c0_8] : memref<1x768xf32, #tpu.memory_space<vmem>>, vector<1x768xf32>
    %c0_9 = arith.constant 0 : index
    %c0_10 = arith.constant 0 : index
    %6 = vector.load %arg6[%c0_9, %c0_10] : memref<1x128xf32, #tpu.memory_space<vmem>>, vector<1x128xf32>
    %7 = tpu.concatenate %4, %5, %6 in 1 : vector<1x128xf32>, vector<1x768xf32>, vector<1x128xf32> -> vector<1x1024xf32>
    %cst = arith.constant 0.000000e+00 : f32
    %8 = vector.broadcast %cst : f32 to vector<1x1024xf32>
    %9 = arith.cmpf ogt, %7, %8 : vector<1x1024xf32>
    %c0_11 = arith.constant 0 : index
    %c0_12 = arith.constant 0 : index
    %10 = vector.load %arg8[%c0_11, %c0_12] : memref<4x1xf32, #tpu.memory_space<vmem>>, vector<4x1xf32>
    %11 = vector.broadcast %10 : vector<4x1xf32> to vector<4x1024xf32>
    %12 = arith.mulf %11, %3 : vector<4x1024xf32>
    %c0_13 = arith.constant 0 : index
    %c0_14 = arith.constant 0 : index
    %13 = vector.load %arg9[%c0_13, %c0_14] : memref<4x1xf32, #tpu.memory_space<vmem>>, vector<4x1xf32>
    %14 = vector.broadcast %13 : vector<4x1xf32> to vector<4x1024xf32>
    %15 = arith.addf %12, %14 : vector<4x1024xf32>
    %cst_15 = arith.constant 0.000000e+00 : f32
    %16 = vector.broadcast %cst_15 : f32 to vector<4x1024xf32>
    %17 = arith.maximumf %15, %16 : vector<4x1024xf32>
    %cst_16 = arith.constant 0.000000e+00 : f32
    %18 = vector.shape_cast %9 : vector<1x1024xi1> to vector<1x1024xi1>
    %19 = vector.broadcast %18 : vector<1x1024xi1> to vector<4x1024xi1>
    %20 = vector.broadcast %cst_16 : f32 to vector<4x1024xf32>
    %21 = arith.select %19, %17, %20 : vector<4x1024xi1>, vector<4x1024xf32>
    %22 = vector.extract_strided_slice %21 {offsets = [0, 109], sizes = [4, 768], strides = [1, 1]} : vector<4x1024xf32> to vector<4x768xf32>
    %c0_17 = arith.constant 0 : index
    %c0_18 = arith.constant 0 : index
    %c0_19 = arith.constant 0 : index
    %23 = vector.load %arg7[%c0_17, %c0_18, %c0_19] : memref<9x4x4xf32, #tpu.memory_space<vmem>>, vector<1x4x4xf32>
    %24 = vector.shape_cast %23 : vector<1x4x4xf32> to vector<4x4xf32>
    %cst_20 = arith.constant dense<0.000000e+00> : vector<4x768xf32>
    %25 = tpu.matmul %24, %22, %cst_20 {dimension_numbers = #tpu.dot_dimension_numbers<[1], [0], [0], [1], [0, 0, 1, 1], [], []>} : vector<4x4xf32>, vector<4x768xf32>, vector<4x768xf32> -> vector<4x768xf32>
    %26 = vector.extract_strided_slice %21 {offsets = [0, 110], sizes = [4, 768], strides = [1, 1]} : vector<4x1024xf32> to vector<4x768xf32>
    %c1 = arith.constant 1 : index
    %c0_21 = arith.constant 0 : index
    %c0_22 = arith.constant 0 : index
    %27 = vector.load %arg7[%c1, %c0_21, %c0_22] : memref<9x4x4xf32, #tpu.memory_space<vmem>>, vector<1x4x4xf32>
    %28 = vector.shape_cast %27 : vector<1x4x4xf32> to vector<4x4xf32>
    %cst_23 = arith.constant dense<0.000000e+00> : vector<4x768xf32>
    %29 = tpu.matmul %28, %26, %cst_23 {dimension_numbers = #tpu.dot_dimension_numbers<[1], [0], [0], [1], [0, 0, 1, 1], [], []>} : vector<4x4xf32>, vector<4x768xf32>, vector<4x768xf32> -> vector<4x768xf32>
    %30 = arith.addf %25, %29 : vector<4x768xf32>
    %31 = vector.extract_strided_slice %21 {offsets = [0, 111], sizes = [4, 768], strides = [1, 1]} : vector<4x1024xf32> to vector<4x768xf32>
    %c2 = arith.constant 2 : index
    %c0_24 = arith.constant 0 : index
    %c0_25 = arith.constant 0 : index
    %32 = vector.load %arg7[%c2, %c0_24, %c0_25] : memref<9x4x4xf32, #tpu.memory_space<vmem>>, vector<1x4x4xf32>
    %33 = vector.shape_cast %32 : vector<1x4x4xf32> to vector<4x4xf32>
    %cst_26 = arith.constant dense<0.000000e+00> : vector<4x768xf32>
    %34 = tpu.matmul %33, %31, %cst_26 {dimension_numbers = #tpu.dot_dimension_numbers<[1], [0], [0], [1], [0, 0, 1, 1], [], []>} : vector<4x4xf32>, vector<4x768xf32>, vector<4x768xf32> -> vector<4x768xf32>
    %35 = arith.addf %30, %34 : vector<4x768xf32>
    %36 = vector.extract_strided_slice %21 {offsets = [0, 127], sizes = [4, 768], strides = [1, 1]} : vector<4x1024xf32> to vector<4x768xf32>
    %c3 = arith.constant 3 : index
    %c0_27 = arith.constant 0 : index
    %c0_28 = arith.constant 0 : index
    %37 = vector.load %arg7[%c3, %c0_27, %c0_28] : memref<9x4x4xf32, #tpu.memory_space<vmem>>, vector<1x4x4xf32>
    %38 = vector.shape_cast %37 : vector<1x4x4xf32> to vector<4x4xf32>
    %cst_29 = arith.constant dense<0.000000e+00> : vector<4x768xf32>
    %39 = tpu.matmul %38, %36, %cst_29 {dimension_numbers = #tpu.dot_dimension_numbers<[1], [0], [0], [1], [0, 0, 1, 1], [], []>} : vector<4x4xf32>, vector<4x768xf32>, vector<4x768xf32> -> vector<4x768xf32>
    %40 = arith.addf %35, %39 : vector<4x768xf32>
    %41 = vector.extract_strided_slice %21 {offsets = [0, 128], sizes = [4, 768], strides = [1, 1]} : vector<4x1024xf32> to vector<4x768xf32>
    %c4 = arith.constant 4 : index
    %c0_30 = arith.constant 0 : index
    %c0_31 = arith.constant 0 : index
    %42 = vector.load %arg7[%c4, %c0_30, %c0_31] : memref<9x4x4xf32, #tpu.memory_space<vmem>>, vector<1x4x4xf32>
    %43 = vector.shape_cast %42 : vector<1x4x4xf32> to vector<4x4xf32>
    %cst_32 = arith.constant dense<0.000000e+00> : vector<4x768xf32>
    %44 = tpu.matmul %43, %41, %cst_32 {dimension_numbers = #tpu.dot_dimension_numbers<[1], [0], [0], [1], [0, 0, 1, 1], [], []>} : vector<4x4xf32>, vector<4x768xf32>, vector<4x768xf32> -> vector<4x768xf32>
    %45 = arith.addf %40, %44 : vector<4x768xf32>
    %46 = vector.extract_strided_slice %21 {offsets = [0, 129], sizes = [4, 768], strides = [1, 1]} : vector<4x1024xf32> to vector<4x768xf32>
    %c5 = arith.constant 5 : index
    %c0_33 = arith.constant 0 : index
    %c0_34 = arith.constant 0 : index
    %47 = vector.load %arg7[%c5, %c0_33, %c0_34] : memref<9x4x4xf32, #tpu.memory_space<vmem>>, vector<1x4x4xf32>
    %48 = vector.shape_cast %47 : vector<1x4x4xf32> to vector<4x4xf32>
    %cst_35 = arith.constant dense<0.000000e+00> : vector<4x768xf32>
    %49 = tpu.matmul %48, %46, %cst_35 {dimension_numbers = #tpu.dot_dimension_numbers<[1], [0], [0], [1], [0, 0, 1, 1], [], []>} : vector<4x4xf32>, vector<4x768xf32>, vector<4x768xf32> -> vector<4x768xf32>
    %50 = arith.addf %45, %49 : vector<4x768xf32>
    %51 = vector.extract_strided_slice %21 {offsets = [0, 145], sizes = [4, 768], strides = [1, 1]} : vector<4x1024xf32> to vector<4x768xf32>
    %c6 = arith.constant 6 : index
    %c0_36 = arith.constant 0 : index
    %c0_37 = arith.constant 0 : index
    %52 = vector.load %arg7[%c6, %c0_36, %c0_37] : memref<9x4x4xf32, #tpu.memory_space<vmem>>, vector<1x4x4xf32>
    %53 = vector.shape_cast %52 : vector<1x4x4xf32> to vector<4x4xf32>
    %cst_38 = arith.constant dense<0.000000e+00> : vector<4x768xf32>
    %54 = tpu.matmul %53, %51, %cst_38 {dimension_numbers = #tpu.dot_dimension_numbers<[1], [0], [0], [1], [0, 0, 1, 1], [], []>} : vector<4x4xf32>, vector<4x768xf32>, vector<4x768xf32> -> vector<4x768xf32>
    %55 = arith.addf %50, %54 : vector<4x768xf32>
    %56 = vector.extract_strided_slice %21 {offsets = [0, 146], sizes = [4, 768], strides = [1, 1]} : vector<4x1024xf32> to vector<4x768xf32>
    %c7 = arith.constant 7 : index
    %c0_39 = arith.constant 0 : index
    %c0_40 = arith.constant 0 : index
    %57 = vector.load %arg7[%c7, %c0_39, %c0_40] : memref<9x4x4xf32, #tpu.memory_space<vmem>>, vector<1x4x4xf32>
    %58 = vector.shape_cast %57 : vector<1x4x4xf32> to vector<4x4xf32>
    %cst_41 = arith.constant dense<0.000000e+00> : vector<4x768xf32>
    %59 = tpu.matmul %58, %56, %cst_41 {dimension_numbers = #tpu.dot_dimension_numbers<[1], [0], [0], [1], [0, 0, 1, 1], [], []>} : vector<4x4xf32>, vector<4x768xf32>, vector<4x768xf32> -> vector<4x768xf32>
    %60 = arith.addf %55, %59 : vector<4x768xf32>
    %61 = vector.extract_strided_slice %21 {offsets = [0, 147], sizes = [4, 768], strides = [1, 1]} : vector<4x1024xf32> to vector<4x768xf32>
    %c8 = arith.constant 8 : index
    %c0_42 = arith.constant 0 : index
    %c0_43 = arith.constant 0 : index
    %62 = vector.load %arg7[%c8, %c0_42, %c0_43] : memref<9x4x4xf32, #tpu.memory_space<vmem>>, vector<1x4x4xf32>
    %63 = vector.shape_cast %62 : vector<1x4x4xf32> to vector<4x4xf32>
    %cst_44 = arith.constant dense<0.000000e+00> : vector<4x768xf32>
    %64 = tpu.matmul %63, %61, %cst_44 {dimension_numbers = #tpu.dot_dimension_numbers<[1], [0], [0], [1], [0, 0, 1, 1], [], []>} : vector<4x4xf32>, vector<4x768xf32>, vector<4x768xf32> -> vector<4x768xf32>
    %65 = arith.addf %60, %64 : vector<4x768xf32>
    %c0_45 = arith.constant 0 : index
    %c0_46 = arith.constant 0 : index
    %66 = vector.load %arg5[%c0_45, %c0_46] : memref<1x768xf32, #tpu.memory_space<vmem>>, vector<1x768xf32>
    %67 = vector.broadcast %66 : vector<1x768xf32> to vector<4x768xf32>
    %68 = arith.mulf %65, %67 : vector<4x768xf32>
    %c0_47 = arith.constant 0 : index
    %c0_48 = arith.constant 0 : index
    %69 = vector.load %arg10[%c0_47, %c0_48] : memref<4x768xf32, #tpu.memory_space<vmem>>, vector<4x768xf32>
    tpu.vector_store %arg10[%c0_47, %c0_48], %68 {strides = array<i32>} : memref<4x768xf32, #tpu.memory_space<vmem>>, vector<4x768xf32>,
    %70 = vector.extract_strided_slice %68 {offsets = [0, 0], sizes = [4, 128], strides = [1, 1]} : vector<4x768xf32> to vector<4x128xf32>
    %71 = arith.mulf %70, %70 : vector<4x128xf32>
    %72 = vector.extract_strided_slice %68 {offsets = [0, 128], sizes = [4, 128], strides = [1, 1]} : vector<4x768xf32> to vector<4x128xf32>
    %73 = arith.addf %70, %72 : vector<4x128xf32>
    %74 = arith.mulf %72, %72 : vector<4x128xf32>
    %75 = arith.addf %71, %74 : vector<4x128xf32>
    %76 = vector.extract_strided_slice %68 {offsets = [0, 256], sizes = [4, 128], strides = [1, 1]} : vector<4x768xf32> to vector<4x128xf32>
    %77 = arith.addf %73, %76 : vector<4x128xf32>
    %78 = arith.mulf %76, %76 : vector<4x128xf32>
    %79 = arith.addf %75, %78 : vector<4x128xf32>
    %80 = vector.extract_strided_slice %68 {offsets = [0, 384], sizes = [4, 128], strides = [1, 1]} : vector<4x768xf32> to vector<4x128xf32>
    %81 = arith.addf %77, %80 : vector<4x128xf32>
    %82 = arith.mulf %80, %80 : vector<4x128xf32>
    %83 = arith.addf %79, %82 : vector<4x128xf32>
    %84 = vector.extract_strided_slice %68 {offsets = [0, 512], sizes = [4, 128], strides = [1, 1]} : vector<4x768xf32> to vector<4x128xf32>
    %85 = arith.addf %81, %84 : vector<4x128xf32>
    %86 = arith.mulf %84, %84 : vector<4x128xf32>
    %87 = arith.addf %83, %86 : vector<4x128xf32>
    %88 = vector.extract_strided_slice %68 {offsets = [0, 640], sizes = [4, 128], strides = [1, 1]} : vector<4x768xf32> to vector<4x128xf32>
    %89 = arith.addf %85, %88 : vector<4x128xf32>
    %90 = arith.mulf %88, %88 : vector<4x128xf32>
    %91 = arith.addf %87, %90 : vector<4x128xf32>
    %cst_49 = arith.constant 0.000000e+00 : f32
    %92 = vector.broadcast %cst_49 : f32 to vector<4x128xf32>
    %93 = tpu.concatenate %89, %92, %91, %92 in 0 : vector<4x128xf32>, vector<4x128xf32>, vector<4x128xf32>, vector<4x128xf32> -> vector<16x128xf32>
    %c0_50 = arith.constant 0 : index
    %c0_51 = arith.constant 0 : index
    %c0_52 = arith.constant 0 : index
    %94 = vector.load %arg11[%c0_50, %c0_51, %c0_52] : memref<1x16x128xf32, #tpu.memory_space<vmem>>, vector<1x16x128xf32>
    %95 = vector.shape_cast %94 : vector<1x16x128xf32> to vector<16x128xf32>
    %96 = vector.shape_cast %93 : vector<16x128xf32> to vector<1x16x128xf32>
    tpu.vector_store %arg11[%c0_50, %c0_51, %c0_52], %96 {strides = array<i32>} : memref<1x16x128xf32, #tpu.memory_space<vmem>>, vector<1x16x128xf32>,
    return
  }
  func.func @transform_0(%arg0: i32) -> (i32, i32) {
    %c6_i32 = arith.constant 6 : i32
    %0 = arith.muli %arg0, %c6_i32 : i32
    %c1_i32 = arith.constant 1 : i32
    %1 = arith.subi %0, %c1_i32 : i32
    %c0_i32 = arith.constant 0 : i32
    %2 = arith.maxsi %1, %c0_i32 : i32
    %c0_i32_0 = arith.constant 0 : i32
    %c0_i32_1 = arith.constant 0 : i32
    return %c0_i32_0, %2 : i32, i32
  }
  func.func @transform_1(%arg0: i32) -> (i32, i32) {
    %c0_i32 = arith.constant 0 : i32
    %c0_i32_0 = arith.constant 0 : i32
    return %c0_i32, %arg0 : i32, i32
  }
  func.func @transform_2(%arg0: i32) -> (i32, i32) {
    %c1_i32 = arith.constant 1 : i32
    %0 = arith.addi %arg0, %c1_i32 : i32
    %c6_i32 = arith.constant 6 : i32
    %1 = arith.muli %0, %c6_i32 : i32
    %c5_i32 = arith.constant 5 : i32
    %2 = arith.minsi %1, %c5_i32 : i32
    %c0_i32 = arith.constant 0 : i32
    %c0_i32_0 = arith.constant 0 : i32
    return %c0_i32, %2 : i32, i32
  }
  func.func @transform_3(%arg0: i32) -> (i32, i32) {
    %c6_i32 = arith.constant 6 : i32
    %0 = arith.muli %arg0, %c6_i32 : i32
    %c1_i32 = arith.constant 1 : i32
    %1 = arith.subi %0, %c1_i32 : i32
    %c0_i32 = arith.constant 0 : i32
    %2 = arith.maxsi %1, %c0_i32 : i32
    %c0_i32_0 = arith.constant 0 : i32
    %c0_i32_1 = arith.constant 0 : i32
    return %c0_i32_0, %2 : i32, i32
  }
  func.func @transform_4(%arg0: i32) -> (i32, i32) {
    %c0_i32 = arith.constant 0 : i32
    %c0_i32_0 = arith.constant 0 : i32
    return %c0_i32, %arg0 : i32, i32
  }
  func.func @transform_5(%arg0: i32) -> (i32, i32) {
    %c1_i32 = arith.constant 1 : i32
    %0 = arith.addi %arg0, %c1_i32 : i32
    %c6_i32 = arith.constant 6 : i32
    %1 = arith.muli %0, %c6_i32 : i32
    %c5_i32 = arith.constant 5 : i32
    %2 = arith.minsi %1, %c5_i32 : i32
    %c0_i32 = arith.constant 0 : i32
    %c0_i32_0 = arith.constant 0 : i32
    return %c0_i32, %2 : i32, i32
  }
  func.func @transform_6(%arg0: i32) -> (i32, i32, i32) {
    %c0_i32 = arith.constant 0 : i32
    %c0_i32_0 = arith.constant 0 : i32
    %c0_i32_1 = arith.constant 0 : i32
    %c0_i32_2 = arith.constant 0 : i32
    return %c0_i32, %c0_i32_0, %c0_i32_1 : i32, i32, i32
  }
  func.func @transform_7(%arg0: i32) -> (i32, i32) {
    %c0_i32 = arith.constant 0 : i32
    %c0_i32_0 = arith.constant 0 : i32
    %c0_i32_1 = arith.constant 0 : i32
    return %c0_i32, %c0_i32_0 : i32, i32
  }
  func.func @transform_8(%arg0: i32) -> (i32, i32) {
    %c0_i32 = arith.constant 0 : i32
    %c0_i32_0 = arith.constant 0 : i32
    %c0_i32_1 = arith.constant 0 : i32
    return %c0_i32, %c0_i32_0 : i32, i32
  }
  func.func @transform_9(%arg0: i32) -> (i32, i32) {
    %c0_i32 = arith.constant 0 : i32
    %c0_i32_0 = arith.constant 0 : i32
    return %c0_i32, %arg0 : i32, i32
  }
  func.func @transform_10(%arg0: i32) -> (i32, i32, i32) {
    %c0_i32 = arith.constant 0 : i32
    %c0_i32_0 = arith.constant 0 : i32
    %c0_i32_1 = arith.constant 0 : i32
    return %arg0, %c0_i32, %c0_i32_0 : i32, i32, i32
  }
}

module attributes {stable_mosaic.version = 11 : i64} {
  func.func @_conv_pass_kernel(%arg0: i32, %arg1: memref<4x128xf32, #tpu.memory_space<vmem>>, %arg2: memref<4x768xf32, #tpu.memory_space<vmem>>, %arg3: memref<4x128xf32, #tpu.memory_space<vmem>>, %arg4: memref<1x128xf32, #tpu.memory_space<vmem>>, %arg5: memref<1x768xf32, #tpu.memory_space<vmem>>, %arg6: memref<1x128xf32, #tpu.memory_space<vmem>>, %arg7: memref<9x4x4xf32, #tpu.memory_space<vmem>>, %arg8: memref<4x1xf32, #tpu.memory_space<vmem>>, %arg9: memref<4x1xf32, #tpu.memory_space<vmem>>, %arg10: memref<4x768xf32, #tpu.memory_space<vmem>>, %arg11: memref<1x16x128xf32, #tpu.memory_space<vmem>>) attributes {dimension_semantics = [#tpu.dimension_semantics<parallel>], iteration_bounds = array<i64: 1>, scalar_prefetch = 0 : i64, scratch_operands = 0 : i64, tpu.core_type = #tpu.core_type<tc>, window_params = [{transform_indices = @transform_0, window_bounds = array<i64: 4, 128>}, {transform_indices = @transform_1, window_bounds = array<i64: 4, 768>}, {transform_indices = @transform_2, window_bounds = array<i64: 4, 128>}, {transform_indices = @transform_3, window_bounds = array<i64: 1, 128>}, {transform_indices = @transform_4, window_bounds = array<i64: 1, 768>}, {transform_indices = @transform_5, window_bounds = array<i64: 1, 128>}, {pipeline_mode = #tpu.pipeline_mode<synchronous>, transform_indices = @transform_6, window_bounds = array<i64: 9, 4, 4>}, {pipeline_mode = #tpu.pipeline_mode<synchronous>, transform_indices = @transform_7, window_bounds = array<i64: 4, 1>}, {pipeline_mode = #tpu.pipeline_mode<synchronous>, transform_indices = @transform_8, window_bounds = array<i64: 4, 1>}, {transform_indices = @transform_9, window_bounds = array<i64: 4, 768>}, {transform_indices = @transform_10, window_bounds = array<i64: 1, 16, 128>}]} {
    %c0 = arith.constant 0 : index
    %c0_0 = arith.constant 0 : index
    %0 = vector.load %arg1[%c0, %c0_0] : memref<4x128xf32, #tpu.memory_space<vmem>>, vector<4x128xf32>
    %c0_1 = arith.constant 0 : index
    %c0_2 = arith.constant 0 : index
    %1 = vector.load %arg2[%c0_1, %c0_2] : memref<4x768xf32, #tpu.memory_space<vmem>>, vector<4x768xf32>
    %c0_3 = arith.constant 0 : index
    %c0_4 = arith.constant 0 : index
    %2 = vector.load %arg3[%c0_3, %c0_4] : memref<4x128xf32, #tpu.memory_space<vmem>>, vector<4x128xf32>
    %3 = tpu.concatenate %0, %1, %2 in 1 : vector<4x128xf32>, vector<4x768xf32>, vector<4x128xf32> -> vector<4x1024xf32>
    %4 = vector.extract_strided_slice %3 {offsets = [0, 109], sizes = [4, 768], strides = [1, 1]} : vector<4x1024xf32> to vector<4x768xf32>
    %c0_5 = arith.constant 0 : index
    %c0_6 = arith.constant 0 : index
    %c0_7 = arith.constant 0 : index
    %5 = vector.load %arg7[%c0_5, %c0_6, %c0_7] : memref<9x4x4xf32, #tpu.memory_space<vmem>>, vector<1x4x4xf32>
    %6 = vector.shape_cast %5 : vector<1x4x4xf32> to vector<4x4xf32>
    %cst = arith.constant dense<0.000000e+00> : vector<4x768xf32>
    %7 = tpu.matmul %6, %4, %cst {dimension_numbers = #tpu.dot_dimension_numbers<[1], [0], [0], [1], [0, 0, 1, 1], [], []>} : vector<4x4xf32>, vector<4x768xf32>, vector<4x768xf32> -> vector<4x768xf32>
    %8 = vector.extract_strided_slice %3 {offsets = [0, 110], sizes = [4, 768], strides = [1, 1]} : vector<4x1024xf32> to vector<4x768xf32>
    %c1 = arith.constant 1 : index
    %c0_8 = arith.constant 0 : index
    %c0_9 = arith.constant 0 : index
    %9 = vector.load %arg7[%c1, %c0_8, %c0_9] : memref<9x4x4xf32, #tpu.memory_space<vmem>>, vector<1x4x4xf32>
    %10 = vector.shape_cast %9 : vector<1x4x4xf32> to vector<4x4xf32>
    %cst_10 = arith.constant dense<0.000000e+00> : vector<4x768xf32>
    %11 = tpu.matmul %10, %8, %cst_10 {dimension_numbers = #tpu.dot_dimension_numbers<[1], [0], [0], [1], [0, 0, 1, 1], [], []>} : vector<4x4xf32>, vector<4x768xf32>, vector<4x768xf32> -> vector<4x768xf32>
    %12 = arith.addf %7, %11 : vector<4x768xf32>
    %13 = vector.extract_strided_slice %3 {offsets = [0, 111], sizes = [4, 768], strides = [1, 1]} : vector<4x1024xf32> to vector<4x768xf32>
    %c2 = arith.constant 2 : index
    %c0_11 = arith.constant 0 : index
    %c0_12 = arith.constant 0 : index
    %14 = vector.load %arg7[%c2, %c0_11, %c0_12] : memref<9x4x4xf32, #tpu.memory_space<vmem>>, vector<1x4x4xf32>
    %15 = vector.shape_cast %14 : vector<1x4x4xf32> to vector<4x4xf32>
    %cst_13 = arith.constant dense<0.000000e+00> : vector<4x768xf32>
    %16 = tpu.matmul %15, %13, %cst_13 {dimension_numbers = #tpu.dot_dimension_numbers<[1], [0], [0], [1], [0, 0, 1, 1], [], []>} : vector<4x4xf32>, vector<4x768xf32>, vector<4x768xf32> -> vector<4x768xf32>
    %17 = arith.addf %12, %16 : vector<4x768xf32>
    %18 = vector.extract_strided_slice %3 {offsets = [0, 127], sizes = [4, 768], strides = [1, 1]} : vector<4x1024xf32> to vector<4x768xf32>
    %c3 = arith.constant 3 : index
    %c0_14 = arith.constant 0 : index
    %c0_15 = arith.constant 0 : index
    %19 = vector.load %arg7[%c3, %c0_14, %c0_15] : memref<9x4x4xf32, #tpu.memory_space<vmem>>, vector<1x4x4xf32>
    %20 = vector.shape_cast %19 : vector<1x4x4xf32> to vector<4x4xf32>
    %cst_16 = arith.constant dense<0.000000e+00> : vector<4x768xf32>
    %21 = tpu.matmul %20, %18, %cst_16 {dimension_numbers = #tpu.dot_dimension_numbers<[1], [0], [0], [1], [0, 0, 1, 1], [], []>} : vector<4x4xf32>, vector<4x768xf32>, vector<4x768xf32> -> vector<4x768xf32>
    %22 = arith.addf %17, %21 : vector<4x768xf32>
    %23 = vector.extract_strided_slice %3 {offsets = [0, 128], sizes = [4, 768], strides = [1, 1]} : vector<4x1024xf32> to vector<4x768xf32>
    %c4 = arith.constant 4 : index
    %c0_17 = arith.constant 0 : index
    %c0_18 = arith.constant 0 : index
    %24 = vector.load %arg7[%c4, %c0_17, %c0_18] : memref<9x4x4xf32, #tpu.memory_space<vmem>>, vector<1x4x4xf32>
    %25 = vector.shape_cast %24 : vector<1x4x4xf32> to vector<4x4xf32>
    %cst_19 = arith.constant dense<0.000000e+00> : vector<4x768xf32>
    %26 = tpu.matmul %25, %23, %cst_19 {dimension_numbers = #tpu.dot_dimension_numbers<[1], [0], [0], [1], [0, 0, 1, 1], [], []>} : vector<4x4xf32>, vector<4x768xf32>, vector<4x768xf32> -> vector<4x768xf32>
    %27 = arith.addf %22, %26 : vector<4x768xf32>
    %28 = vector.extract_strided_slice %3 {offsets = [0, 129], sizes = [4, 768], strides = [1, 1]} : vector<4x1024xf32> to vector<4x768xf32>
    %c5 = arith.constant 5 : index
    %c0_20 = arith.constant 0 : index
    %c0_21 = arith.constant 0 : index
    %29 = vector.load %arg7[%c5, %c0_20, %c0_21] : memref<9x4x4xf32, #tpu.memory_space<vmem>>, vector<1x4x4xf32>
    %30 = vector.shape_cast %29 : vector<1x4x4xf32> to vector<4x4xf32>
    %cst_22 = arith.constant dense<0.000000e+00> : vector<4x768xf32>
    %31 = tpu.matmul %30, %28, %cst_22 {dimension_numbers = #tpu.dot_dimension_numbers<[1], [0], [0], [1], [0, 0, 1, 1], [], []>} : vector<4x4xf32>, vector<4x768xf32>, vector<4x768xf32> -> vector<4x768xf32>
    %32 = arith.addf %27, %31 : vector<4x768xf32>
    %33 = vector.extract_strided_slice %3 {offsets = [0, 145], sizes = [4, 768], strides = [1, 1]} : vector<4x1024xf32> to vector<4x768xf32>
    %c6 = arith.constant 6 : index
    %c0_23 = arith.constant 0 : index
    %c0_24 = arith.constant 0 : index
    %34 = vector.load %arg7[%c6, %c0_23, %c0_24] : memref<9x4x4xf32, #tpu.memory_space<vmem>>, vector<1x4x4xf32>
    %35 = vector.shape_cast %34 : vector<1x4x4xf32> to vector<4x4xf32>
    %cst_25 = arith.constant dense<0.000000e+00> : vector<4x768xf32>
    %36 = tpu.matmul %35, %33, %cst_25 {dimension_numbers = #tpu.dot_dimension_numbers<[1], [0], [0], [1], [0, 0, 1, 1], [], []>} : vector<4x4xf32>, vector<4x768xf32>, vector<4x768xf32> -> vector<4x768xf32>
    %37 = arith.addf %32, %36 : vector<4x768xf32>
    %38 = vector.extract_strided_slice %3 {offsets = [0, 146], sizes = [4, 768], strides = [1, 1]} : vector<4x1024xf32> to vector<4x768xf32>
    %c7 = arith.constant 7 : index
    %c0_26 = arith.constant 0 : index
    %c0_27 = arith.constant 0 : index
    %39 = vector.load %arg7[%c7, %c0_26, %c0_27] : memref<9x4x4xf32, #tpu.memory_space<vmem>>, vector<1x4x4xf32>
    %40 = vector.shape_cast %39 : vector<1x4x4xf32> to vector<4x4xf32>
    %cst_28 = arith.constant dense<0.000000e+00> : vector<4x768xf32>
    %41 = tpu.matmul %40, %38, %cst_28 {dimension_numbers = #tpu.dot_dimension_numbers<[1], [0], [0], [1], [0, 0, 1, 1], [], []>} : vector<4x4xf32>, vector<4x768xf32>, vector<4x768xf32> -> vector<4x768xf32>
    %42 = arith.addf %37, %41 : vector<4x768xf32>
    %43 = vector.extract_strided_slice %3 {offsets = [0, 147], sizes = [4, 768], strides = [1, 1]} : vector<4x1024xf32> to vector<4x768xf32>
    %c8 = arith.constant 8 : index
    %c0_29 = arith.constant 0 : index
    %c0_30 = arith.constant 0 : index
    %44 = vector.load %arg7[%c8, %c0_29, %c0_30] : memref<9x4x4xf32, #tpu.memory_space<vmem>>, vector<1x4x4xf32>
    %45 = vector.shape_cast %44 : vector<1x4x4xf32> to vector<4x4xf32>
    %cst_31 = arith.constant dense<0.000000e+00> : vector<4x768xf32>
    %46 = tpu.matmul %45, %43, %cst_31 {dimension_numbers = #tpu.dot_dimension_numbers<[1], [0], [0], [1], [0, 0, 1, 1], [], []>} : vector<4x4xf32>, vector<4x768xf32>, vector<4x768xf32> -> vector<4x768xf32>
    %47 = arith.addf %42, %46 : vector<4x768xf32>
    %c0_32 = arith.constant 0 : index
    %c0_33 = arith.constant 0 : index
    %48 = vector.load %arg5[%c0_32, %c0_33] : memref<1x768xf32, #tpu.memory_space<vmem>>, vector<1x768xf32>
    %49 = vector.broadcast %48 : vector<1x768xf32> to vector<4x768xf32>
    %50 = arith.mulf %47, %49 : vector<4x768xf32>
    %c0_34 = arith.constant 0 : index
    %c0_35 = arith.constant 0 : index
    %51 = vector.load %arg10[%c0_34, %c0_35] : memref<4x768xf32, #tpu.memory_space<vmem>>, vector<4x768xf32>
    tpu.vector_store %arg10[%c0_34, %c0_35], %50 {strides = array<i32>} : memref<4x768xf32, #tpu.memory_space<vmem>>, vector<4x768xf32>,
    %52 = vector.extract_strided_slice %50 {offsets = [0, 0], sizes = [4, 128], strides = [1, 1]} : vector<4x768xf32> to vector<4x128xf32>
    %53 = arith.mulf %52, %52 : vector<4x128xf32>
    %54 = vector.extract_strided_slice %50 {offsets = [0, 128], sizes = [4, 128], strides = [1, 1]} : vector<4x768xf32> to vector<4x128xf32>
    %55 = arith.addf %52, %54 : vector<4x128xf32>
    %56 = arith.mulf %54, %54 : vector<4x128xf32>
    %57 = arith.addf %53, %56 : vector<4x128xf32>
    %58 = vector.extract_strided_slice %50 {offsets = [0, 256], sizes = [4, 128], strides = [1, 1]} : vector<4x768xf32> to vector<4x128xf32>
    %59 = arith.addf %55, %58 : vector<4x128xf32>
    %60 = arith.mulf %58, %58 : vector<4x128xf32>
    %61 = arith.addf %57, %60 : vector<4x128xf32>
    %62 = vector.extract_strided_slice %50 {offsets = [0, 384], sizes = [4, 128], strides = [1, 1]} : vector<4x768xf32> to vector<4x128xf32>
    %63 = arith.addf %59, %62 : vector<4x128xf32>
    %64 = arith.mulf %62, %62 : vector<4x128xf32>
    %65 = arith.addf %61, %64 : vector<4x128xf32>
    %66 = vector.extract_strided_slice %50 {offsets = [0, 512], sizes = [4, 128], strides = [1, 1]} : vector<4x768xf32> to vector<4x128xf32>
    %67 = arith.addf %63, %66 : vector<4x128xf32>
    %68 = arith.mulf %66, %66 : vector<4x128xf32>
    %69 = arith.addf %65, %68 : vector<4x128xf32>
    %70 = vector.extract_strided_slice %50 {offsets = [0, 640], sizes = [4, 128], strides = [1, 1]} : vector<4x768xf32> to vector<4x128xf32>
    %71 = arith.addf %67, %70 : vector<4x128xf32>
    %72 = arith.mulf %70, %70 : vector<4x128xf32>
    %73 = arith.addf %69, %72 : vector<4x128xf32>
    %cst_36 = arith.constant 0.000000e+00 : f32
    %74 = vector.broadcast %cst_36 : f32 to vector<4x128xf32>
    %75 = tpu.concatenate %71, %74, %73, %74 in 0 : vector<4x128xf32>, vector<4x128xf32>, vector<4x128xf32>, vector<4x128xf32> -> vector<16x128xf32>
    %c0_37 = arith.constant 0 : index
    %c0_38 = arith.constant 0 : index
    %c0_39 = arith.constant 0 : index
    %76 = vector.load %arg11[%c0_37, %c0_38, %c0_39] : memref<1x16x128xf32, #tpu.memory_space<vmem>>, vector<1x16x128xf32>
    %77 = vector.shape_cast %76 : vector<1x16x128xf32> to vector<16x128xf32>
    %78 = vector.shape_cast %75 : vector<16x128xf32> to vector<1x16x128xf32>
    tpu.vector_store %arg11[%c0_37, %c0_38, %c0_39], %78 {strides = array<i32>} : memref<1x16x128xf32, #tpu.memory_space<vmem>>, vector<1x16x128xf32>,
    return
  }
  func.func @transform_0(%arg0: i32) -> (i32, i32) {
    %c6_i32 = arith.constant 6 : i32
    %0 = arith.muli %arg0, %c6_i32 : i32
    %c1_i32 = arith.constant 1 : i32
    %1 = arith.subi %0, %c1_i32 : i32
    %c0_i32 = arith.constant 0 : i32
    %2 = arith.maxsi %1, %c0_i32 : i32
    %c0_i32_0 = arith.constant 0 : i32
    %c0_i32_1 = arith.constant 0 : i32
    return %c0_i32_0, %2 : i32, i32
  }
  func.func @transform_1(%arg0: i32) -> (i32, i32) {
    %c0_i32 = arith.constant 0 : i32
    %c0_i32_0 = arith.constant 0 : i32
    return %c0_i32, %arg0 : i32, i32
  }
  func.func @transform_2(%arg0: i32) -> (i32, i32) {
    %c1_i32 = arith.constant 1 : i32
    %0 = arith.addi %arg0, %c1_i32 : i32
    %c6_i32 = arith.constant 6 : i32
    %1 = arith.muli %0, %c6_i32 : i32
    %c5_i32 = arith.constant 5 : i32
    %2 = arith.minsi %1, %c5_i32 : i32
    %c0_i32 = arith.constant 0 : i32
    %c0_i32_0 = arith.constant 0 : i32
    return %c0_i32, %2 : i32, i32
  }
  func.func @transform_3(%arg0: i32) -> (i32, i32) {
    %c6_i32 = arith.constant 6 : i32
    %0 = arith.muli %arg0, %c6_i32 : i32
    %c1_i32 = arith.constant 1 : i32
    %1 = arith.subi %0, %c1_i32 : i32
    %c0_i32 = arith.constant 0 : i32
    %2 = arith.maxsi %1, %c0_i32 : i32
    %c0_i32_0 = arith.constant 0 : i32
    %c0_i32_1 = arith.constant 0 : i32
    return %c0_i32_0, %2 : i32, i32
  }
  func.func @transform_4(%arg0: i32) -> (i32, i32) {
    %c0_i32 = arith.constant 0 : i32
    %c0_i32_0 = arith.constant 0 : i32
    return %c0_i32, %arg0 : i32, i32
  }
  func.func @transform_5(%arg0: i32) -> (i32, i32) {
    %c1_i32 = arith.constant 1 : i32
    %0 = arith.addi %arg0, %c1_i32 : i32
    %c6_i32 = arith.constant 6 : i32
    %1 = arith.muli %0, %c6_i32 : i32
    %c5_i32 = arith.constant 5 : i32
    %2 = arith.minsi %1, %c5_i32 : i32
    %c0_i32 = arith.constant 0 : i32
    %c0_i32_0 = arith.constant 0 : i32
    return %c0_i32, %2 : i32, i32
  }
  func.func @transform_6(%arg0: i32) -> (i32, i32, i32) {
    %c0_i32 = arith.constant 0 : i32
    %c0_i32_0 = arith.constant 0 : i32
    %c0_i32_1 = arith.constant 0 : i32
    %c0_i32_2 = arith.constant 0 : i32
    return %c0_i32, %c0_i32_0, %c0_i32_1 : i32, i32, i32
  }
  func.func @transform_7(%arg0: i32) -> (i32, i32) {
    %c0_i32 = arith.constant 0 : i32
    %c0_i32_0 = arith.constant 0 : i32
    %c0_i32_1 = arith.constant 0 : i32
    return %c0_i32, %c0_i32_0 : i32, i32
  }
  func.func @transform_8(%arg0: i32) -> (i32, i32) {
    %c0_i32 = arith.constant 0 : i32
    %c0_i32_0 = arith.constant 0 : i32
    %c0_i32_1 = arith.constant 0 : i32
    return %c0_i32, %c0_i32_0 : i32, i32
  }
  func.func @transform_9(%arg0: i32) -> (i32, i32) {
    %c0_i32 = arith.constant 0 : i32
    %c0_i32_0 = arith.constant 0 : i32
    return %c0_i32, %arg0 : i32, i32
  }
  func.func @transform_10(%arg0: i32) -> (i32, i32, i32) {
    %c0_i32 = arith.constant 0 : i32
    %c0_i32_0 = arith.constant 0 : i32
    %c0_i32_1 = arith.constant 0 : i32
    return %arg0, %c0_i32, %c0_i32_0 : i32, i32, i32
  }
}

</mosaic_0001>

<bundles_post_ra>
// kernel: resblock_forward.5
= control target key start
LH: loop header
LB: loop body
LE: loop exit
PB: predicated region body
PF: predicated region fallthrough
CT: control target
= control target key end

     0   :  { %9 = vsyncpa [#allocation3], 0  ;;  %s379_s0 = inlined_call_operand.hbm [shape: f32[4,768], index: 0, kind: input, shape index: {}]   ;;  %s380_s1 = inlined_call_operand.hbm [shape: f32[4,768], index: 1, kind: input, shape index: {}]   ;;  %s381_s2 = inlined_call_operand.hbm [shape: f32[4,1], index: 2, kind: input, shape index: {}]   ;;  %s382_s3 = inlined_call_operand.hbm [shape: f32[4,1], index: 3, kind: input, shape index: {}]   ;;  %s383_s4 = inlined_call_operand.hbm [shape: f32[4,768], index: 4, kind: output, shape index: {}]  }
   0x1   :  { %10 = vsyncpa [#allocation6], 0 }
   0x2   :  { %11 = vsyncpa [#allocation9], 0 }
   0x3   :  { %12 = vsyncpa [#allocation4], 0  ;;  %s288_s15 = smov [#allocation5]   ;;  %s289_s17 = smov [#allocation2]  }
   0x4   :  { %s29_s16 = sshll.u32 %s288_s15, 4  ;;  %s19_s18 = sshll.u32 %s289_s17, 4  ;;  %s30_s16 = int_to_ptr.vmem [resolvable:$true] %s29_s16  ;;  %s20_s18 = int_to_ptr.vmem [resolvable:$true] %s19_s18 }
   0x5   :  { %s170_s21 = scalar_lea.hbm %s380_s1, 384 }
   0x6   :  { %p171_p0 = scmp.ne.s32.totalorder %s380_s1, %s170_s21  ;;  %p174_p1 = scmp.lt.u32.totalorder %s170_s21, %s380_s1 }
   0x8   :  { %p176_p2 = pnand %p174_p1, %p171_p0 }
   0xa   :  { %179 = shalt.err (!%p176_p2)
}
   0xb   :  { %s180_s26 = scalar_lea.vmem %s30_s16, 384  ;;  %p185_p4 = scmp.lt.s32.totalorder %s30_s16, %s30_s16 }
   0xc   :  { %p181_p3 = scmp.ne.s32.totalorder %s30_s16, %s180_s26  ;;  %p186_p5 = scmp.lt.s32.totalorder %s180_s26, %s180_s26 }
   0xe   :  { %p187_p6 = por %p186_p5, %p185_p4 }
  0x10   :  { %p188_p7 = pnand %p187_p6, %p181_p3 }
  0x12   :  { %191 = shalt.err (!%p188_p7)
}
  0x13   :  { %32 = dma.hbm_to_vmem [thread:$0]  %s380_s1, 384, %s30_s16, [#allocation6]  }
  0x14   :  { %s192_s5 = scalar_lea.hbm %s379_s0, 384 }
  0x15   :  { %p193_p8 = scmp.ne.s32.totalorder %s379_s0, %s192_s5  ;;  %p196_p9 = scmp.lt.u32.totalorder %s192_s5, %s379_s0 }
  0x17   :  { %p198_p10 = pnand %p196_p9, %p193_p8 }
  0x19   :  { %201 = shalt.err (!%p198_p10)
}
  0x1a   :  { %s202_s10 = scalar_lea.vmem %s20_s18, 384  ;;  %p207_p12 = scmp.lt.s32.totalorder %s20_s18, %s20_s18 }
  0x1b   :  { %p203_p11 = scmp.ne.s32.totalorder %s20_s18, %s202_s10  ;;  %p208_p13 = scmp.lt.s32.totalorder %s202_s10, %s202_s10 }
  0x1d   :  { %p209_p0 = por %p208_p13, %p207_p12 }
  0x1f   :  { %p210_p1 = pnand %p209_p0, %p203_p11 }
  0x21   :  { %213 = shalt.err (!%p210_p1)
}
  0x22   :  { %22 = dma.hbm_to_vmem [thread:$0]  %s379_s0, 384, %s20_s18, [#allocation3]  }
  0x23   :  { %s290_s12 = smov [#allocation7]   ;;  %s291_s14 = smov [#allocation8]  }
  0x24   :  { %s39_s13 = sshll.u32 %s290_s12, 4  ;;  %s49_s15 = sshll.u32 %s291_s14, 4  ;;  %s40_s13 = int_to_ptr.vmem [resolvable:$true] %s39_s13  ;;  %s50_s15 = int_to_ptr.vmem [resolvable:$true] %s49_s15 }
  0x25   :  { %s214_s19 = scalar_lea.hbm %s381_s2, 64 }
  0x26   :  { %p215_p2 = scmp.ne.s32.totalorder %s381_s2, %s214_s19  ;;  %p218_p3 = scmp.lt.u32.totalorder %s214_s19, %s381_s2 }
  0x28   :  { %p220_p4 = pnand %p218_p3, %p215_p2 }
  0x2a   :  { %223 = shalt.err (!%p220_p4)
}
  0x2b   :  { %s224_s0 = scalar_lea.vmem %s40_s13, 64  ;;  %p229_p6 = scmp.lt.s32.totalorder %s40_s13, %s40_s13 }
  0x2c   :  { %p225_p5 = scmp.ne.s32.totalorder %s40_s13, %s224_s0  ;;  %p230_p7 = scmp.lt.s32.totalorder %s224_s0, %s224_s0 }
  0x2e   :  { %p231_p8 = por %p230_p7, %p229_p6 }
  0x30   :  { %p232_p9 = pnand %p231_p8, %p225_p5 }
  0x32   :  { %235 = shalt.err (!%p232_p9)
}
  0x33   :  { %42 = dma.hbm_to_vmem [thread:$0]  %s381_s2, 64, %s40_s13, [#allocation6]  }
  0x34   :  { %s236_s27 = scalar_lea.hbm %s382_s3, 64 }
  0x35   :  { %p237_p10 = scmp.ne.s32.totalorder %s382_s3, %s236_s27  ;;  %p240_p11 = scmp.lt.u32.totalorder %s236_s27, %s382_s3 }
  0x37   :  { %p242_p12 = pnand %p240_p11, %p237_p10 }
  0x39   :  { %245 = shalt.err (!%p242_p12)
}
  0x3a   :  { %s246_s6 = scalar_lea.vmem %s50_s15, 64  ;;  %p251_p0 = scmp.lt.s32.totalorder %s50_s15, %s50_s15 }
  0x3b   :  { %p247_p13 = scmp.ne.s32.totalorder %s50_s15, %s246_s6  ;;  %p252_p1 = scmp.lt.s32.totalorder %s246_s6, %s246_s6 }
  0x3d   :  { %p253_p2 = por %p252_p1, %p251_p0 }
  0x3f   :  { %p254_p3 = pnand %p253_p2, %p247_p13 }
  0x41   :  { %257 = shalt.err (!%p254_p3)
}
  0x42   :  { %52 = dma.hbm_to_vmem [thread:$0]  %s382_s3, 64, %s50_s15, [#allocation9]  }
  0x43   :  { %280 = dma.done.wait [#allocation3], 384  }
  0x44   :  { %281 = vsyncadd [#allocation3], 4294966912 }
  0x45   :  { %282 = dma.done.wait [#allocation6], 448  }
  0x46   :  { %283 = vsyncadd [#allocation6], 4294966848 }
  0x47   :  { %284 = dma.done.wait [#allocation9], 64  }
  0x48   :  { %285 = vsyncadd [#allocation9], 4294967232  ;;  %v292_v0 = vmov 0   ;;  %v65_v1 = vld [vmem:[#allocation7] sm:$0xf]  ;;  %v66_v3 = vld [vmem:[#allocation2] sm:$0xff] }
  0x49   :  { %163 = vset.pattern.permute.xlu0 %v292_v0  ;;  %v89_v2 = vld [vmem:[#allocation8] sm:$0xf]  ;;  %v67_v4 = vld [vmem:[#allocation2 + $0x8] sm:$0xff]  ;;  %v77_v6 = vcombine.high %v66_v3, %v66_v3  ;;  %v101_v8 = vld [vmem:[#allocation5] sm:$0xff]  ;;  %s293_s3 = smov [#allocation10]  }
  0x4a   :  { %71 = vperm.xlu0 %163, %v65_v1   ;;  %v68_v5 = vld [vmem:[#allocation2 + $0x10] sm:$0xff]  ;;  %v78_v7 = vcombine.high %v67_v4, %v67_v4  ;;  %v102_v9 = vld [vmem:[#allocation5 + $0x8] sm:$0xff]  ;;  %v103_v12 = vld [vmem:[#allocation5 + $0x10] sm:$0xff]  ;;  %v107_v13 = vcombine.high %v101_v8, %v101_v8  ;;  %s146_s8 = sshll.u32 %s293_s3, 4  ;;  %s147_s8 = int_to_ptr.vmem [resolvable:$true] %s146_s8 }
  0x4b   :  { %v79_v11 = vcombine.high %v68_v5, %v68_v5  ;;  %v108_v14 = vcombine.high %v102_v9, %v102_v9  ;;  %v109_v22 = vcombine.high %v103_v12, %v103_v12  ;;  %s258_s9 = scalar_lea.vmem %s147_s8, 384  ;;  %p263_p5 = scmp.lt.s32.totalorder %s147_s8, %s147_s8 }
  0x4c   :  { %p259_p4 = scmp.ne.s32.totalorder %s147_s8, %s258_s9  ;;  %p264_p6 = scmp.lt.s32.totalorder %s258_s9, %s258_s9 }
  0x4e   :  { %92 = vperm.xlu0 %163, %v89_v2   ;;  %p265_p7 = por %p264_p6, %p263_p5 }
  0x50   :  { %p266_p8 = pnand %p265_p7, %p259_p4 }
  0xc9   :  { %v72_v10 = vpop.permute.xlu0 %71 }
  0xca   :  { %v83_v15 = vmul.f32 %v72_v10, %v66_v3  ;;  %v84_v16 = vmul.f32 %v77_v6, %v72_v10  ;;  %v85_v17 = vmul.f32 %v72_v10, %v67_v4  ;;  %v86_v18 = vmul.f32 %v78_v7, %v72_v10 }
  0xcb   :  { %v87_v19 = vmul.f32 %v72_v10, %v68_v5  ;;  %v88_v20 = vmul.f32 %v79_v11, %v72_v10 }
  0xcd   :  { %v93_v21 = vpop.permute.xlu0 %92 }
  0xce   :  { %v95_v23 = vadd.f32 %v93_v21, %v83_v15  ;;  %v96_v24 = vadd.f32 %v93_v21, %v84_v16  ;;  %v97_v25 = vadd.f32 %v93_v21, %v85_v17  ;;  %v98_v26 = vadd.f32 %v93_v21, %v86_v18 }
  0xcf   :  { %v99_v27 = vadd.f32 %v93_v21, %v87_v19  ;;  %v100_v28 = vadd.f32 %v93_v21, %v88_v20 }
  0xd0   :  { %v113_v29 = vadd.f32 %v101_v8, %v95_v23  ;;  %v114_v30 = vadd.f32 %v107_v13, %v96_v24  ;;  %v115_v31 = vadd.f32 %v102_v9, %v97_v25  ;;  %v116_v32 = vadd.f32 %v108_v14, %v98_v26 }
  0xd1   :  { %v117_v33 = vadd.f32 %v103_v12, %v99_v27  ;;  %v118_v34 = vadd.f32 %v109_v22, %v100_v28 }
  0xd2   :  { %v119_v35 = vmax.f32 %v113_v29, 0.0  ;;  %v120_v36 = vmax.f32 %v114_v30, 0.0  ;;  %v121_v37 = vmax.f32 %v115_v31, 0.0  ;;  %v122_v38 = vmax.f32 %v116_v32, 0.0 }
  0xd3   :  { %v123_v39 = vmax.f32 %v117_v33, 0.0  ;;  %v124_v40 = vmax.f32 %v118_v34, 0.0 }
  0xd4   :  { %v131_v41 = vcombine.low %v119_v35, %v120_v36  ;;  %v132_v42 = vcombine.low %v121_v37, %v122_v38 }
  0xd5   :  { %v133_v43 = vcombine.low %v123_v39, %v124_v40 }
  0xd6   :  { %137 = vst [vmem:[#allocation10] sm:$0xff] %v131_v41  ;;  %138 = vst [vmem:[#allocation10 + $0x8] sm:$0xff] %v132_v42 }
  0xd7   :  { %139 = vst [vmem:[#allocation10 + $0x10] sm:$0xff] %v133_v43 }
  0xd8   :  { %269 = shalt.err (!%p266_p8)
}
  0xd9   :  { %s270_s11 = scalar_lea.hbm %s383_s4, 384 }
  0xda   :  { %p271_p9 = scmp.ne.s32.totalorder %s383_s4, %s270_s11  ;;  %p274_p10 = scmp.lt.u32.totalorder %s270_s11, %s383_s4 }
  0xdc   :  { %p276_p11 = pnand %p274_p10, %p271_p9 }
  0xde   :  { %279 = shalt.err (!%p276_p11)
}
  0xdf   :  { %149 = dma.vmem_to_hbm [thread:$0]  %s147_s8, 384, %s383_s4, [#allocation4]  }
  0xe0   :  { %286 = dma.done.wait [#allocation4], 384  }
  0xe1   :  { %287 = vsyncadd [#allocation4], 4294966912 }
  0xe2   :  { %153 = vsyncpa [#allocation3], 1 }
  0xe3   :  { %154 = vsyncpa [#allocation6], 1 }
  0xe4   :  { %155 = vsyncpa [#allocation9], 1 }
  0xe5   :  { %156 = vsyncpa [#allocation4], 1 }

// kernel: resblock_forward.3
= control target key start
LH: loop header
LB: loop body
LE: loop exit
PB: predicated region body
PF: predicated region fallthrough
CT: control target
= control target key end

     0   :  { %16 = vsyncpa [#allocation3], 0  ;;  %s3472_s0 = inlined_call_operand.hbm [shape: f32[4,768], index: 0, kind: input, shape index: {}, may-alias: {0,1,2}]   ;;  %s3473_s1 = inlined_call_operand.hbm [shape: f32[4,768], index: 1, kind: input, shape index: {}, may-alias: {0,1,2}]   ;;  %s3474_s2 = inlined_call_operand.hbm [shape: f32[4,768], index: 2, kind: input, shape index: {}, may-alias: {0,1,2}]   ;;  %s3475_s3 = inlined_call_operand.hbm [shape: f32[1,768], index: 3, kind: input, shape index: {}, may-alias: {3,4,5}]   ;;  %s3476_s4 = inlined_call_operand.hbm [shape: f32[1,768], index: 4, kind: input, shape index: {}, may-alias: {3,4,5}]   ;;  %s3477_s5 = inlined_call_operand.hbm [shape: f32[1,768], index: 5, kind: input, shape index: {}, may-alias: {3,4,5}]   ;;  %s3478_s6 = inlined_call_operand.hbm [shape: f32[9,4,4], index: 6, kind: input, shape index: {}]   ;;  %s3479_s7 = inlined_call_operand.hbm [shape: f32[4,1], index: 7, kind: input, shape index: {}]   ;;  %s3480_s8 = inlined_call_operand.hbm [shape: f32[4,1], index: 8, kind: input, shape index: {}]   ;;  %s3481_s9 = inlined_call_operand.hbm [shape: f32[4,768], index: 9, kind: output, shape index: {0}]   ;;  %s3482_s10 = inlined_call_operand.hbm [shape: f32[1,16,128], index: 10, kind: output, shape index: {1}]  }
   0x1   :  { %17 = vsyncpa [#allocation6], 0 }
   0x2   :  { %18 = vsyncpa [#allocation9], 0 }
   0x3   :  { %19 = vsyncpa [#allocation12], 0 }
   0x4   :  { %20 = vsyncpa [#allocation15], 0 }
   0x5   :  { %21 = vsyncpa [#allocation4], 0 }
   0x6   :  { %22 = vsyncpa [#allocation19], 0  ;;  %s3010_s13 = smov [#allocation5]   ;;  %s3011_s15 = smov [#allocation8]  }
   0x7   :  { %s45_s14 = sshll.u32 %s3010_s13, 4  ;;  %s77_s16 = sshll.u32 %s3011_s15, 4  ;;  %s46_s14 = int_to_ptr.vmem [resolvable:$true] %s45_s14  ;;  %s3089_s16 = int_to_ptr.vmem [resolvable:$true] %s77_s16 }
   0x8   :  { %s2748_s19 = scalar_lea.hbm %s3473_s1, 384 }
   0x9   :  { %p2749_p0 = scmp.ne.s32.totalorder %s3473_s1, %s2748_s19  ;;  %p2752_p1 = scmp.lt.u32.totalorder %s2748_s19, %s3473_s1 }
   0xb   :  { %p2754_p2 = pnand %p2752_p1, %p2749_p0 }
   0xd   :  { %2757 = shalt.err (!%p2754_p2)
}
   0xe   :  { %s2758_s24 = scalar_lea.vmem %s46_s14, 384  ;;  %p2763_p4 = scmp.lt.s32.totalorder %s46_s14, %s46_s14 }
   0xf   :  { %p2759_p3 = scmp.ne.s32.totalorder %s46_s14, %s2758_s24  ;;  %p2764_p5 = scmp.lt.s32.totalorder %s2758_s24, %s2758_s24 }
  0x11   :  { %p2765_p6 = por %p2764_p5, %p2763_p4 }
  0x13   :  { %p2766_p7 = pnand %p2765_p6, %p2759_p3 }
  0x15   :  { %2769 = shalt.err (!%p2766_p7)
}
  0x16   :  { %48 = dma.hbm_to_vmem [thread:$0]  %s3473_s1, 384, %s46_s14, [#allocation6]  }
  0x17   :  { %s2770_s29 = scalar_lea.hbm %s3475_s3, 16  ;;  %s2772_s15 = scalar_lea.hbm %s3475_s3, 96 }
  0x18   :  { %p2771_p8 = scmp.ne.s32.totalorder %s3475_s3, %s2770_s29  ;;  %p2773_p9 = scmp.lt.u32.totalorder %s2772_s15, %s2770_s29 }
  0x19   :  { %p2774_p10 = scmp.lt.u32.totalorder %s2770_s29, %s3475_s3 }
  0x1b   :  { %p2775_p11 = por %p2774_p10, %p2773_p9 }
  0x1d   :  { %p2776_p12 = pnand %p2775_p11, %p2771_p8 }
  0x1f   :  { %2779 = shalt.err (!%p2776_p12)
}
  0x20   :  { %s2780_s1 = scalar_lea.vmem %s3089_s16, 16  ;;  %s2784_s14 = scalar_lea.vmem %s3089_s16, 32 }
  0x21   :  { %p2781_p13 = scmp.ne.s32.totalorder %s3089_s16, %s2780_s1  ;;  %p2785_p0 = scmp.lt.s32.totalorder %s3089_s16, %s3089_s16 }
  0x22   :  { %p2786_p1 = scmp.lt.s32.totalorder %s2784_s14, %s2780_s1 }
  0x24   :  { %p2787_p2 = por %p2786_p1, %p2785_p0 }
  0x26   :  { %p2788_p3 = pnand %p2787_p2, %p2781_p13 }
  0x28   :  { %2791 = shalt.err (!%p2788_p3)
}
  0x29   :  { %80 = dma.hbm_to_vmem [thread:$0]  %s3475_s3, 16, %s3089_s16, [#allocation9]  }
  0x2a   :  { %s101_s23 = scalar_lea.hbm %s3477_s5, 80  ;;  %s3012_s24 = smov [#allocation11]  }
  0x2b   :  { %s103_s25 = sshll.u32 %s3012_s24, 4  ;;  %s3013_s26 = smov [#allocation14]   ;;  %s104_s25 = int_to_ptr.vmem [resolvable:$true] %s103_s25 }
  0x2c   :  { %s125_s27 = sshll.u32 %s3013_s26, 4  ;;  %s2816_s30 = scalar_lea.hbm %s3477_s5, 96  ;;  %s126_s27 = int_to_ptr.vmem [resolvable:$true] %s125_s27 }
  0x2d   :  { %p2793_p4 = scmp.ne.s32.totalorder %s101_s23, %s2816_s30  ;;  %p2795_p5 = scmp.lt.u32.totalorder %s101_s23, %s3477_s5 }
  0x2e   :  { %p2796_p6 = scmp.lt.u32.totalorder %s2816_s30, %s2816_s30  ;;  %p2798_p8 = scmp.lt.u32.totalorder %s2816_s30, %s101_s23 }
  0x30   :  { %p2797_p7 = por %p2796_p6, %p2795_p5 }
  0x32   :  { %p2799_p9 = por %p2798_p8, %p2797_p7 }
  0x34   :  { %p2800_p10 = pnand %p2799_p9, %p2793_p4 }
  0x36   :  { %2803 = shalt.err (!%p2800_p10)
}
  0x37   :  { %s2804_s3 = scalar_lea.vmem %s104_s25, 16  ;;  %s2808_s16 = scalar_lea.vmem %s104_s25, 32 }
  0x38   :  { %p2805_p11 = scmp.ne.s32.totalorder %s104_s25, %s2804_s3  ;;  %p2809_p12 = scmp.lt.s32.totalorder %s104_s25, %s104_s25 }
  0x39   :  { %p2810_p13 = scmp.lt.s32.totalorder %s2808_s16, %s2804_s3 }
  0x3b   :  { %p2811_p0 = por %p2810_p13, %p2809_p12 }
  0x3d   :  { %p2812_p1 = pnand %p2811_p0, %p2805_p11 }
  0x3f   :  { %2815 = shalt.err (!%p2812_p1)
}
  0x40   :  { %106 = dma.hbm_to_vmem [thread:$0]  %s101_s23, 16, %s104_s25, [#allocation12]  }
  0x41   :  { %s2817_s5 = scalar_lea.hbm %s3479_s7, 64 }
  0x42   :  { %p2818_p2 = scmp.ne.s32.totalorder %s3479_s7, %s2817_s5  ;;  %p2821_p3 = scmp.lt.u32.totalorder %s2817_s5, %s3479_s7 }
  0x44   :  { %p2823_p4 = pnand %p2821_p3, %p2818_p2 }
  0x46   :  { %2826 = shalt.err (!%p2823_p4)
}
  0x47   :  { %s2827_s19 = scalar_lea.vmem %s126_s27, 64  ;;  %p2832_p6 = scmp.lt.s32.totalorder %s126_s27, %s126_s27 }
  0x48   :  { %p2828_p5 = scmp.ne.s32.totalorder %s126_s27, %s2827_s19  ;;  %p2833_p7 = scmp.lt.s32.totalorder %s2827_s19, %s2827_s19 }
  0x4a   :  { %p2834_p8 = por %p2833_p7, %p2832_p6 }
  0x4c   :  { %p2835_p9 = pnand %p2834_p8, %p2828_p5 }
  0x4e   :  { %2838 = shalt.err (!%p2835_p9)
}
  0x4f   :  { %128 = dma.hbm_to_vmem [thread:$0]  %s3479_s7, 64, %s126_s27, [#allocation15]  }
  0x50   :  { %s3014_s22 = smov [#allocation2]   ;;  %s3148_s26 = scalar_lea.hbm %s3474_s2, 320 }
  0x51   :  { %s35_s23 = sshll.u32 %s3014_s22, 4  ;;  %s2839_s30 = scalar_lea.hbm %s3472_s0, 64  ;;  %s36_s23 = int_to_ptr.vmem [resolvable:$true] %s35_s23 }
  0x52   :  { %p2840_p10 = scmp.ne.s32.totalorder %s3472_s0, %s2839_s30  ;;  %s2841_s7 = scalar_lea.hbm %s3472_s0, 384 }
  0x53   :  { %p2842_p11 = scmp.lt.u32.totalorder %s2841_s7, %s2839_s30  ;;  %p2843_p12 = scmp.lt.u32.totalorder %s2839_s30, %s3472_s0 }
  0x55   :  { %p2844_p13 = por %p2843_p12, %p2842_p11 }
  0x57   :  { %p2845_p0 = pnand %p2844_p13, %p2840_p10 }
  0x59   :  { %2848 = shalt.err (!%p2845_p0)
}
  0x5a   :  { %s2849_s15 = scalar_lea.vmem %s36_s23, 64  ;;  %p2854_p2 = scmp.lt.s32.totalorder %s36_s23, %s36_s23 }
  0x5b   :  { %p2850_p1 = scmp.ne.s32.totalorder %s36_s23, %s2849_s15  ;;  %p2855_p3 = scmp.lt.s32.totalorder %s2849_s15, %s2849_s15 }
  0x5d   :  { %p2856_p4 = por %p2855_p3, %p2854_p2 }
  0x5f   :  { %p2857_p5 = pnand %p2856_p4, %p2850_p1 }
  0x61   :  { %2860 = shalt.err (!%p2857_p5)
}
  0x62   :  { %38 = dma.hbm_to_vmem [thread:$0]  %s3472_s0, 64, %s36_s23, [#allocation3]  }
  0x63   :  { %s3015_s18 = smov [#allocation7]   ;;  %s3016_s14 = smov [#allocation10]  }
  0x64   :  { %s61_s1 = sshll.u32 %s3015_s18, 4  ;;  %s87_s19 = sshll.u32 %s3016_s14, 4  ;;  %s62_s1 = int_to_ptr.vmem [resolvable:$true] %s61_s1  ;;  %s88_s19 = int_to_ptr.vmem [resolvable:$true] %s87_s19 }
  0x65   :  { %s2885_s22 = scalar_lea.hbm %s3474_s2, 384  ;;  %p2864_p7 = scmp.lt.u32.totalorder %s3148_s26, %s3474_s2 }
  0x66   :  { %p2862_p6 = scmp.ne.s32.totalorder %s3148_s26, %s2885_s22  ;;  %p2865_p8 = scmp.lt.u32.totalorder %s2885_s22, %s2885_s22 }
  0x67   :  { %p2867_p10 = scmp.lt.u32.totalorder %s2885_s22, %s3148_s26 }
  0x68   :  { %p2866_p9 = por %p2865_p8, %p2864_p7 }
  0x6a   :  { %p2868_p11 = por %p2867_p10, %p2866_p9 }
  0x6c   :  { %p2869_p12 = pnand %p2868_p11, %p2862_p6 }
  0x6e   :  { %2872 = shalt.err (!%p2869_p12)
}
  0x6f   :  { %s2873_s0 = scalar_lea.vmem %s62_s1, 64  ;;  %p2878_p0 = scmp.lt.s32.totalorder %s62_s1, %s62_s1 }
  0x70   :  { %p2874_p13 = scmp.ne.s32.totalorder %s62_s1, %s2873_s0  ;;  %p2879_p1 = scmp.lt.s32.totalorder %s2873_s0, %s2873_s0 }
  0x72   :  { %p2880_p2 = por %p2879_p1, %p2878_p0 }
  0x74   :  { %p2881_p3 = pnand %p2880_p2, %p2874_p13 }
  0x76   :  { %2884 = shalt.err (!%p2881_p3)
}
  0x77   :  { %64 = dma.hbm_to_vmem [thread:$0]  %s3148_s26, 64, %s62_s1, [#allocation6]  }
  0x78   :  { %s2886_s2 = scalar_lea.hbm %s3476_s4, 96 }
  0x79   :  { %p2887_p4 = scmp.ne.s32.totalorder %s3476_s4, %s2886_s2  ;;  %p2890_p5 = scmp.lt.u32.totalorder %s2886_s2, %s3476_s4 }
  0x7b   :  { %p2892_p6 = pnand %p2890_p5, %p2887_p4 }
  0x7d   :  { %2895 = shalt.err (!%p2892_p6)
}
  0x7e   :  { %s2896_s3 = scalar_lea.vmem %s88_s19, 96  ;;  %p2901_p8 = scmp.lt.s32.totalorder %s88_s19, %s88_s19 }
  0x7f   :  { %p2897_p7 = scmp.ne.s32.totalorder %s88_s19, %s2896_s3  ;;  %p2902_p9 = scmp.lt.s32.totalorder %s2896_s3, %s2896_s3 }
  0x81   :  { %p2903_p10 = por %p2902_p9, %p2901_p8 }
  0x83   :  { %p2904_p11 = pnand %p2903_p10, %p2897_p7 }
  0x85   :  { %2907 = shalt.err (!%p2904_p11)
}
  0x86   :  { %90 = dma.hbm_to_vmem [thread:$0]  %s3476_s4, 96, %s88_s19, [#allocation9]  }
  0x87   :  { %s3017_s7 = smov [#allocation13]   ;;  %s2908_s5 = scalar_lea.hbm %s3478_s6, 576 }
  0x88   :  { %s112_s27 = sshll.u32 %s3017_s7, 4  ;;  %p2909_p12 = scmp.ne.s32.totalorder %s3478_s6, %s2908_s5  ;;  %s113_s27 = int_to_ptr.vmem [resolvable:$true] %s112_s27 }
  0x89   :  { %p2912_p13 = scmp.lt.u32.totalorder %s2908_s5, %s3478_s6 }
  0x8b   :  { %p2914_p0 = pnand %p2912_p13, %p2909_p12 }
  0x8d   :  { %2917 = shalt.err (!%p2914_p0)
}
  0x8e   :  { %s2918_s20 = scalar_lea.vmem %s113_s27, 576  ;;  %p2923_p2 = scmp.lt.s32.totalorder %s113_s27, %s113_s27 }
  0x8f   :  { %p2919_p1 = scmp.ne.s32.totalorder %s113_s27, %s2918_s20  ;;  %p2924_p3 = scmp.lt.s32.totalorder %s2918_s20, %s2918_s20 }
  0x91   :  { %p2925_p4 = por %p2924_p3, %p2923_p2 }
  0x93   :  { %p2926_p5 = pnand %p2925_p4, %p2919_p1 }
  0x95   :  { %2929 = shalt.err (!%p2926_p5)
}
  0x96   :  { %s3018_s4 = smov 64   ;;  %s3019_s19 = smov 4  }
  0x97   :  { %118 = dma.hbm_to_vmem [thread:$0]  %s3478_s6, 576, %s113_s27, [#allocation12], %s3018_s4, %s3018_s4, %s3019_s19  }
  0x98   :  { %s3020_s24 = smov [#allocation16]   ;;  %s2930_s28 = scalar_lea.hbm %s3480_s8, 64 }
  0x99   :  { %s135_s25 = sshll.u32 %s3020_s24, 4  ;;  %p2931_p6 = scmp.ne.s32.totalorder %s3480_s8, %s2930_s28  ;;  %s136_s25 = int_to_ptr.vmem [resolvable:$true] %s135_s25 }
  0x9a   :  { %p2934_p7 = scmp.lt.u32.totalorder %s2930_s28, %s3480_s8 }
  0x9c   :  { %p2936_p8 = pnand %p2934_p7, %p2931_p6 }
  0x9e   :  { %2939 = shalt.err (!%p2936_p8)
}
  0x9f   :  { %s2940_s12 = scalar_lea.vmem %s136_s25, 64  ;;  %p2945_p10 = scmp.lt.s32.totalorder %s136_s25, %s136_s25 }
  0xa0   :  { %p2941_p9 = scmp.ne.s32.totalorder %s136_s25, %s2940_s12  ;;  %p2946_p11 = scmp.lt.s32.totalorder %s2940_s12, %s2940_s12 }
  0xa2   :  { %p2947_p12 = por %p2946_p11, %p2945_p10 }
  0xa4   :  { %p2948_p13 = pnand %p2947_p12, %p2941_p9 }
  0xa6   :  { %2951 = shalt.err (!%p2948_p13)
}
  0xa7   :  { %138 = dma.hbm_to_vmem [thread:$0]  %s3480_s8, 64, %s136_s25, [#allocation15]  }
  0xa8   :  { %2996 = dma.done.wait [#allocation3], 64  }
  0xa9   :  { %2997 = vsyncadd [#allocation3], 4294967232 }
  0xaa   :  { %2998 = dma.done.wait [#allocation6], 448  }
  0xab   :  { %2999 = vsyncadd [#allocation6], 4294966848 }
  0xac   :  { %3000 = dma.done.wait [#allocation9], 112  }
  0xad   :  { %3001 = vsyncadd [#allocation9], 4294967184 }
  0xae   :  { %3002 = dma.done.wait [#allocation12], 592  }
  0xaf   :  { %3003 = vsyncadd [#allocation12], 4294966704 }
  0xb0   :  { %3004 = dma.done.wait [#allocation15], 128  }
  0xb1   :  { %3005 = vsyncadd [#allocation15], 4294967168  ;;  %v3021_v0 = vmov 0.0   ;;  %v3213_v1 = vld [vmem:[#allocation5] sm:$0xff]  ;;  %v182_v2 = vld [vmem:[#allocation2] sm:$0xf] }
  0xb2   :  { %299 = vmatprep.mubr.f32.mxu1 %v3021_v0  ;;  %799 = vmatprep.mubr.f32.mxu0 %v3021_v0  ;;  %s3022_s26 = smov 18   ;;  %v3218_v3 = vcombine.high %v3213_v1, %v3213_v1  ;;  %v3220_v4 = vld [vmem:[#allocation5 + $0x8] sm:$0xff]  ;;  %v3228_v6 = vld [vmem:[#allocation5 + $0x10] sm:$0xff]  ;;  %s3023_s8 = smov 19   ;;  %v186_v8 = vld [vmem:[#allocation7] sm:$0xf] }
  0xb3   :  { %199 = vrot.lane.b32.xlu0 %v3213_v1, %s3022_s26  ;;  %197 = vrot.lane.b32.xlu1 %v182_v2, %s3022_s26  ;;  %v3226_v5 = vcombine.high %v3220_v4, %v3220_v4  ;;  %v3234_v7 = vcombine.high %v3228_v6, %v3228_v6  ;;  %s3024_s16 = smov 17   ;;  %s3025_s7 = smov 1   ;;  %vm211_vm0 = vcmask 146432   ;;  %vm222_vm1 = vcmask 1043456   ;;  %v195_v14 = vld [vmem:[#allocation13 + $0x4] sm:$0xf] }
  0xb4   :  { %s3026_s27 = smov 127   ;;  %s3027_s13 = smov 111   ;;  %vm218_vm2 = vcmask 31744   ;;  %vm462_vm3 = vcmask 154624   ;;  %v193_v28 = vld [vmem:[#allocation13] sm:$0xf] }
  0xb5   :  { %s3028_s15 = smov 110   ;;  %s3029_s5 = smov 109   ;;  %vm713_vm4 = vcmask 138240   ;;  %v698_v42 = vld [vmem:[#allocation13 + $0x8] sm:$0xf]  ;;  %vm970_vm5 = vcmask 7168  }
  0xb6   :  { %v955_v56 = vld [vmem:[#allocation13 + $0xc] sm:$0xf]  ;;  %vm1464_vm6 = vcmask 1039360   ;;  %vm1721_vm7 = vcmask 908288   ;;  %vm1978_vm8 = vcmask 900096   ;;  %vm2235_vm9 = vcmask 891904  }
  0xb7   :  { %201 = vrot.lane.b32.xlu0 %v3218_v3, %s3022_s26  ;;  %203 = vrot.lane.b32.xlu1 %v3220_v4, %s3022_s26  ;;  %s3030_s17 = smov [#allocation17]   ;;  %s3031_s1 = smov [#allocation18]  }
  0xb8   :  { %s2555_s18 = sshll.u32 %s3030_s17, 4  ;;  %s2564_s14 = sshll.u32 %s3031_s1, 4  ;;  %s2556_s18 = int_to_ptr.vmem [resolvable:$true] %s2555_s18  ;;  %s3439_s14 = int_to_ptr.vmem [resolvable:$true] %s2564_s14 }
  0xb9   :  { %s2952_s20 = scalar_lea.vmem %s2556_s18, 384  ;;  %p2957_p1 = scmp.lt.s32.totalorder %s2556_s18, %s2556_s18 }
  0xba   :  { %p2953_p0 = scmp.ne.s32.totalorder %s2556_s18, %s2952_s20  ;;  %p2958_p2 = scmp.lt.s32.totalorder %s2952_s20, %s2952_s20 }
  0xbb   :  { %205 = vrot.lane.b32.xlu0 %v3226_v5, %s3022_s26  ;;  %207 = vrot.lane.b32.xlu1 %v3228_v6, %s3022_s26 }
  0xbc   :  { %p2959_p3 = por %p2958_p2, %p2957_p1 }
  0xbe   :  { %p2960_p4 = pnand %p2959_p3, %p2953_p0 }
  0xbf   :  { %209 = vrot.lane.b32.xlu0 %v3234_v7, %s3022_s26  ;;  %450 = vrot.lane.b32.xlu1 %v3213_v1, %s3023_s8 }
  0xc3   :  { %452 = vrot.lane.b32.xlu0 %v3218_v3, %s3023_s8  ;;  %448 = vrot.lane.b32.xlu1 %v182_v2, %s3023_s8 }
  0xc7   :  { %454 = vrot.lane.b32.xlu0 %v3220_v4, %s3023_s8  ;;  %456 = vrot.lane.b32.xlu1 %v3226_v5, %s3023_s8 }
  0xcb   :  { %701 = vrot.lane.b32.xlu0 %v3213_v1, %s3024_s16  ;;  %703 = vrot.lane.b32.xlu1 %v3218_v3, %s3024_s16 }
  0xcf   :  { %458 = vrot.lane.b32.xlu0 %v3228_v6, %s3023_s8  ;;  %460 = vrot.lane.b32.xlu1 %v3234_v7, %s3023_s8 }
  0xd3   :  { %699 = vrot.lane.b32.xlu0 %v182_v2, %s3024_s16  ;;  %709 = vrot.lane.b32.xlu1 %v3228_v6, %s3024_s16 }
  0xd7   :  { %711 = vrot.lane.b32.xlu0 %v3234_v7, %s3024_s16  ;;  %705 = vrot.lane.b32.xlu1 %v3220_v4, %s3024_s16 }
  0xdb   :  { %707 = vrot.lane.b32.xlu0 %v3226_v5, %s3024_s16  ;;  %958 = vrot.lane.b32.xlu1 %v3213_v1, %s3025_s7 }
  0xdf   :  { %960 = vrot.lane.b32.xlu0 %v3218_v3, %s3025_s7  ;;  %956 = vrot.lane.b32.xlu1 %v182_v2, %s3025_s7 }
  0xe3   :  { %966 = vrot.lane.b32.xlu0 %v3228_v6, %s3025_s7  ;;  %968 = vrot.lane.b32.xlu1 %v3234_v7, %s3025_s7 }
  0xe7   :  { %962 = vrot.lane.b32.xlu0 %v3220_v4, %s3025_s7  ;;  %964 = vrot.lane.b32.xlu1 %v3226_v5, %s3025_s7 }
  0xeb   :  { %1452 = vrot.lane.b32.xlu0 %v3218_v3, %s3026_s27  ;;  %1454 = vrot.lane.b32.xlu1 %v3220_v4, %s3026_s27 }
  0xef   :  { %1450 = vrot.lane.b32.xlu0 %v3213_v1, %s3026_s27  ;;  %1460 = vrot.lane.b32.xlu1 %v3234_v7, %s3026_s27 }
  0xf3   :  { %1462 = vrot.lane.b32.xlu0 %v186_v8, %s3026_s27  ;;  %1456 = vrot.lane.b32.xlu1 %v3226_v5, %s3026_s27 }
  0xf7   :  { %1458 = vrot.lane.b32.xlu0 %v3228_v6, %s3026_s27  ;;  %1709 = vrot.lane.b32.xlu1 %v3218_v3, %s3027_s13 }
  0xfb   :  { %1711 = vrot.lane.b32.xlu0 %v3220_v4, %s3027_s13  ;;  %1707 = vrot.lane.b32.xlu1 %v3213_v1, %s3027_s13 }
  0xff   :  { %1717 = vrot.lane.b32.xlu0 %v3234_v7, %s3027_s13  ;;  %1719 = vrot.lane.b32.xlu1 %v186_v8, %s3027_s13 }
 0x103   :  { %1713 = vrot.lane.b32.xlu0 %v3226_v5, %s3027_s13  ;;  %1715 = vrot.lane.b32.xlu1 %v3228_v6, %s3027_s13 }
 0x107   :  { %1966 = vrot.lane.b32.xlu0 %v3218_v3, %s3028_s15  ;;  %1968 = vrot.lane.b32.xlu1 %v3220_v4, %s3028_s15 }
 0x10b   :  { %1964 = vrot.lane.b32.xlu0 %v3213_v1, %s3028_s15  ;;  %1974 = vrot.lane.b32.xlu1 %v3234_v7, %s3028_s15 }
 0x10f   :  { %1976 = vrot.lane.b32.xlu0 %v186_v8, %s3028_s15  ;;  %1970 = vrot.lane.b32.xlu1 %v3226_v5, %s3028_s15 }
 0x113   :  { %1972 = vrot.lane.b32.xlu0 %v3228_v6, %s3028_s15  ;;  %2223 = vrot.lane.b32.xlu1 %v3218_v3, %s3029_s5 }
 0x117   :  { %2225 = vrot.lane.b32.xlu0 %v3220_v4, %s3029_s5  ;;  %2221 = vrot.lane.b32.xlu1 %v3213_v1, %s3029_s5 }
 0x11b   :  { %2227 = vrot.lane.b32.xlu0 %v3226_v5, %s3029_s5  ;;  %2229 = vrot.lane.b32.xlu1 %v3228_v6, %s3029_s5 }
 0x11f   :  { %2231 = vrot.lane.b32.xlu0 %v3234_v7, %s3029_s5  ;;  %2233 = vrot.lane.b32.xlu1 %v186_v8, %s3029_s5 }
 0x125   :  { %v200_v9 = vpop.permute.xlu0 %199  ;;  %v198_v10 = vpop.permute.xlu1 %197 }
 0x126   :  { %v212_v15 = vsel %vm211_vm0, %v198_v10, %v200_v9  ;;  %v1212_v10 = vld [vmem:[#allocation13 + $0x10] sm:$0xf] }
 0x129   :  { %v202_v11 = vpop.permute.xlu0 %201  ;;  %v204_v12 = vpop.permute.xlu1 %203 }
 0x12a   :  { %v213_v13 = vsel %vm211_vm0, %v200_v9, %v202_v11  ;;  %v214_v19 = vsel %vm211_vm0, %v202_v11, %v204_v12 }
 0x12b   :  { %2592 = vmatprep.subr.msk.mxu1 %vm222_vm1, %v213_v13 }
 0x12c   :  { %2593 = vmatpush1.msk.msra.mxu1 %vm222_vm1, %v212_v15 }
 0x12d   :  { %v206_v16 = vpop.permute.xlu0 %205  ;;  %v208_v17 = vpop.permute.xlu1 %207  ;;  %2594 = vmatmul.mubr.msk.f32.vlgmr.msra.gmra.mrb[0].mxu1 %vm218_vm2, %v195_v14 }
 0x12e   :  { %v215_v18 = vsel %vm211_vm0, %v204_v12, %v206_v16  ;;  %370 = vmatprep.mubr.f32.mxu1 %v3021_v0  ;;  %v216_v23 = vsel %vm211_vm0, %v206_v16, %v208_v17 }
 0x12f   :  { %2595 = vmatprep.subr.msk.mxu1 %vm222_vm1, %v215_v18 }
 0x130   :  { %2596 = vmatpush1.msk.msra.mxu1 %vm222_vm1, %v214_v19 }
 0x131   :  { %v210_v20 = vpop.permute.xlu0 %209  ;;  %v451_v21 = vpop.permute.xlu1 %450  ;;  %2597 = vmatmul.mubr.msk.f32.vlgmr.msra.gmra.mrb[2].mxu1 %vm218_vm2, %v195_v14 }
 0x132   :  { %v217_v22 = vsel %vm211_vm0, %v208_v17, %v210_v20  ;;  %441 = vmatprep.mubr.f32.mxu1 %v3021_v0 }
 0x133   :  { %2598 = vmatprep.subr.msk.mxu1 %vm222_vm1, %v217_v22  ;;  %v1706_v22 = vld [vmem:[#allocation13 + $0x18] sm:$0xf] }
 0x134   :  { %2599 = vmatpush1.msk.msra.mxu1 %vm222_vm1, %v216_v23 }
 0x135   :  { %v453_v24 = vpop.permute.xlu0 %452  ;;  %v449_v25 = vpop.permute.xlu1 %448  ;;  %2600 = vmatmul.mubr.msk.f32.vlgmr.msra.gmra.mrb[4].mxu1 %vm218_vm2, %v195_v14 }
 0x136   :  { %v464_v26 = vsel %vm462_vm3, %v451_v21, %v453_v24  ;;  %v463_v27 = vsel %vm462_vm3, %v449_v25, %v451_v21  ;;  %548 = vmatprep.mubr.f32.mxu1 %v3021_v0 }
 0x137   :  { %2601 = vmatprep.subr.msk.mxu1 %vm222_vm1, %v464_v26 }
 0x138   :  { %2602 = vmatpush1.msk.msra.mxu1 %vm222_vm1, %v463_v27 }
 0x139   :  { %v455_v29 = vpop.permute.xlu0 %454  ;;  %v457_v30 = vpop.permute.xlu1 %456  ;;  %2603 = vmatmul.mubr.msk.f32.vlgmr.msra.gmra.mrb[0].mxu1 %vm218_vm2, %v193_v28 }
 0x13a   :  { %v465_v31 = vsel %vm462_vm3, %v453_v24, %v455_v29  ;;  %v466_v32 = vsel %vm462_vm3, %v455_v29, %v457_v30  ;;  %619 = vmatprep.mubr.f32.mxu1 %v3021_v0 }
 0x13b   :  { %2604 = vmatprep.subr.msk.mxu1 %vm222_vm1, %v466_v32 }
 0x13c   :  { %2605 = vmatpush1.msk.msra.mxu1 %vm222_vm1, %v465_v31 }
 0x13d   :  { %v702_v33 = vpop.permute.xlu0 %701  ;;  %v704_v34 = vpop.permute.xlu1 %703  ;;  %2606 = vmatmul.mubr.msk.f32.vlgmr.msra.gmra.mrb[2].mxu1 %vm218_vm2, %v193_v28 }
 0x13e   :  { %v715_v35 = vsel %vm713_vm4, %v702_v33, %v704_v34  ;;  %690 = vmatprep.mubr.f32.mxu1 %v3021_v0 }
 0x13f   :  { %2610 = vmatprep.subr.msk.mxu0 %vm222_vm1, %v715_v35 }
 0x141   :  { %v459_v36 = vpop.permute.xlu0 %458  ;;  %v461_v37 = vpop.permute.xlu1 %460 }
 0x142   :  { %v467_v38 = vsel %vm462_vm3, %v457_v30, %v459_v36  ;;  %v468_v39 = vsel %vm462_vm3, %v459_v36, %v461_v37  ;;  %v1963_v36 = vld [vmem:[#allocation13 + $0x1c] sm:$0xf] }
 0x143   :  { %2607 = vmatprep.subr.msk.mxu1 %vm222_vm1, %v468_v39 }
 0x144   :  { %2608 = vmatpush1.msk.msra.mxu1 %vm222_vm1, %v467_v38 }
 0x145   :  { %v700_v40 = vpop.permute.xlu0 %699  ;;  %v710_v41 = vpop.permute.xlu1 %709  ;;  %2609 = vmatmul.mubr.msk.f32.vlgmr.msra.gmra.mrb[4].mxu1 %vm218_vm2, %v193_v28 }
 0x146   :  { %v714_v43 = vsel %vm713_vm4, %v700_v40, %v702_v33  ;;  %870 = vmatprep.mubr.f32.mxu1 %v3021_v0 }
 0x147   :  { %2611 = vmatpush1.msk.msra.mxu0 %vm222_vm1, %v714_v43 }
 0x148   :  { %2612 = vmatmul.mubr.msk.f32.vlgmr.msra.gmra.mrb[0].mxu0 %vm218_vm2, %v698_v42 }
 0x149   :  { %v712_v44 = vpop.permute.xlu0 %711  ;;  %v706_v45 = vpop.permute.xlu1 %705  ;;  %941 = vmatprep.mubr.f32.mxu0 %v3021_v0 }
 0x14a   :  { %v719_v46 = vsel %vm713_vm4, %v710_v41, %v712_v44  ;;  %v716_v51 = vsel %vm713_vm4, %v704_v34, %v706_v45 }
 0x14b   :  { %2616 = vmatprep.subr.msk.mxu0 %vm222_vm1, %v719_v46 }
 0x14d   :  { %v708_v47 = vpop.permute.xlu0 %707  ;;  %v959_v48 = vpop.permute.xlu1 %958 }
 0x14e   :  { %v717_v49 = vsel %vm713_vm4, %v706_v45, %v708_v47  ;;  %v718_v50 = vsel %vm713_vm4, %v708_v47, %v710_v41 }
 0x14f   :  { %2613 = vmatprep.subr.msk.mxu1 %vm222_vm1, %v717_v49  ;;  %2617 = vmatpush1.msk.msra.mxu0 %vm222_vm1, %v718_v50  ;;  %v2220_v50 = vld [vmem:[#allocation13 + $0x20] sm:$0xf] }
 0x150   :  { %2614 = vmatpush1.msk.msra.mxu1 %vm222_vm1, %v716_v51  ;;  %2618 = vmatmul.mubr.msk.f32.vlgmr.msra.gmra.mrb[2].mxu0 %vm218_vm2, %v698_v42 }
 0x151   :  { %v961_v52 = vpop.permute.xlu0 %960  ;;  %v957_v53 = vpop.permute.xlu1 %956  ;;  %1056 = vmatprep.mubr.f32.mxu0 %v3021_v0  ;;  %2615 = vmatmul.mubr.msk.f32.vlgmr.msra.gmra.mrb[2].mxu1 %vm218_vm2, %v698_v42 }
 0x152   :  { %v972_v54 = vsel %vm970_vm5, %v959_v48, %v961_v52  ;;  %v971_v55 = vsel %vm970_vm5, %v957_v53, %v959_v48  ;;  %1127 = vmatprep.mubr.f32.mxu1 %v3021_v0 }
 0x153   :  { %2619 = vmatprep.subr.msk.mxu0 %vm222_vm1, %v972_v54 }
 0x154   :  { %2620 = vmatpush1.msk.msra.mxu0 %vm222_vm1, %v971_v55 }
 0x155   :  { %v967_v57 = vpop.permute.xlu0 %966  ;;  %v969_v58 = vpop.permute.xlu1 %968  ;;  %2621 = vmatmul.mubr.msk.f32.vlgmr.msra.gmra.mrb[0].mxu0 %vm218_vm2, %v955_v56 }
 0x156   :  { %v976_v59 = vsel %vm970_vm5, %v967_v57, %v969_v58  ;;  %1198 = vmatprep.mubr.f32.mxu0 %v3021_v0 }
 0x157   :  { %2625 = vmatprep.subr.msk.mxu0 %vm222_vm1, %v976_v59 }
 0x159   :  { %v963_v60 = vpop.permute.xlu0 %962  ;;  %v965_v61 = vpop.permute.xlu1 %964 }
 0x15a   :  { %v973_v62 = vsel %vm970_vm5, %v961_v52, %v963_v60  ;;  %v974_v63 = vsel %vm970_vm5, %v963_v60, %v965_v61  ;;  %v975_v2 = vsel %vm970_vm5, %v965_v61, %v967_v57 }
 0x15b   :  { %2622 = vmatprep.subr.msk.mxu1 %vm222_vm1, %v974_v63  ;;  %2626 = vmatpush1.msk.msra.mxu0 %vm222_vm1, %v975_v2 }
 0x15c   :  { %2623 = vmatpush1.msk.msra.mxu1 %vm222_vm1, %v973_v62  ;;  %2627 = vmatmul.mubr.msk.f32.vlgmr.msra.gmra.mrb[2].mxu0 %vm218_vm2, %v955_v56  ;;  %v2478_v62 = vlaneseq }
 0x15d   :  { %v1453_v8 = vpop.permute.xlu0 %1452  ;;  %2628 = vmatprep.subr.msk.mxu0 %vm222_vm1, %v3218_v3  ;;  %v1455_v9 = vpop.permute.xlu1 %1454  ;;  %1292 = vmatprep.mubr.f32.mxu0 %v3021_v0 }
 0x15e   :  { %2629 = vmatpush1.msk.msra.mxu0 %vm222_vm1, %v3213_v1  ;;  %2624 = vmatmul.mubr.msk.f32.vlgmr.msra.gmra.mrb[2].mxu1 %vm218_vm2, %v955_v56  ;;  %v1466_v3 = vsel %vm1464_vm6, %v1453_v8, %v1455_v9  ;;  %v2479_v63 = vshrl.u32 %v2478_v62, 7 }
 0x15f   :  { %2634 = vmatprep.subr.msk.mxu0 %vm222_vm1, %v3234_v7  ;;  %2631 = vmatprep.subr.msk.mxu1 %vm222_vm1, %v3226_v5  ;;  %v1448_v7 = vld [vmem:[#allocation13 + $0x14] sm:$0xf] }
 0x160   :  { %2630 = vmatmul.mubr.msk.f32.vlgmr.msra.gmra.mrb[0].mxu0 %vm218_vm2, %v1212_v10  ;;  %2632 = vmatpush1.msk.msra.mxu1 %vm222_vm1, %v3220_v4  ;;  %v2480_v2 = vsub.s32 0, %v2479_v63 }
 0x161   :  { %2635 = vmatpush1.msk.msra.mxu0 %vm222_vm1, %v3228_v6  ;;  %v1451_v11 = vpop.permute.xlu0 %1450  ;;  %v1461_v1 = vpop.permute.xlu1 %1460  ;;  %1434 = vmatprep.mubr.f32.mxu0 %v3021_v0 }
 0x162   :  { %v1465_v12 = vsel %vm1464_vm6, %v1451_v11, %v1453_v8  ;;  %2637 = vmatprep.subr.msk.mxu0 %vm222_vm1, %v1466_v3  ;;  %1363 = vmatprep.mubr.f32.mxu1 %v3021_v0  ;;  %v2476_v8 = vld [vmem:[#allocation10] sm:$0x3f]  ;;  %v2492_v3 = vsub.s32 3, %v2479_v63 }
 0x163   :  { %v2481_v11 = vrot.slane %v2476_v8, %v2480_v2 }
 0x164   :  { %2636 = vmatmul.mubr.msk.f32.vlgmr.msra.gmra.mrb[2].mxu0 %vm218_vm2, %v1212_v10 }
 0x165   :  { %2638 = vmatpush1.msk.msra.mxu0 %vm222_vm1, %v1465_v12  ;;  %v1463_v4 = vpop.permute.xlu0 %1462  ;;  %v1457_v5 = vpop.permute.xlu1 %1456  ;;  %1550 = vmatprep.mubr.f32.mxu0 %v3021_v0 }
 0x166   :  { %v1470_v6 = vsel %vm1464_vm6, %v1461_v1, %v1463_v4  ;;  %2633 = vmatmul.mubr.msk.f32.vlgmr.msra.gmra.mrb[2].mxu1 %vm218_vm2, %v1212_v10  ;;  %v1467_v17 = vsel %vm1464_vm6, %v1455_v9, %v1457_v5  ;;  %v2484_v9 = vsub.s32 1, %v2479_v63  ;;  %v2488_v10 = vsub.s32 2, %v2479_v63 }
 0x167   :  { %2643 = vmatprep.subr.msk.mxu0 %vm222_vm1, %v1470_v6  ;;  %1621 = vmatprep.mubr.f32.mxu1 %v3021_v0 }
 0x168   :  { %2639 = vmatmul.mubr.msk.f32.vlgmr.msra.gmra.mrb[0].mxu0 %vm218_vm2, %v1448_v7  ;;  %v2485_v12 = vrot.slane %v2476_v8, %v2484_v9 }
 0x169   :  { %v1459_v13 = vpop.permute.xlu0 %1458  ;;  %v1710_v14 = vpop.permute.xlu1 %1709  ;;  %1692 = vmatprep.mubr.f32.mxu0 %v3021_v0 }
 0x16a   :  { %v1468_v15 = vsel %vm1464_vm6, %v1457_v5, %v1459_v13  ;;  %v1469_v16 = vsel %vm1464_vm6, %v1459_v13, %v1461_v1  ;;  %v2493_v13 = vrot.slane %v2476_v8, %v2492_v3 }
 0x16b   :  { %2640 = vmatprep.subr.msk.mxu1 %vm222_vm1, %v1468_v15  ;;  %2644 = vmatpush1.msk.msra.mxu0 %vm222_vm1, %v1469_v16  ;;  %v2496_v15 = vsub.s32 4, %v2479_v63 }
 0x16c   :  { %2641 = vmatpush1.msk.msra.mxu1 %vm222_vm1, %v1467_v17  ;;  %2645 = vmatmul.mubr.msk.f32.vlgmr.msra.gmra.mrb[2].mxu0 %vm218_vm2, %v1448_v7 }
 0x16d   :  { %v1712_v18 = vpop.permute.xlu0 %1711  ;;  %v1708_v19 = vpop.permute.xlu1 %1707  ;;  %1807 = vmatprep.mubr.f32.mxu0 %v3021_v0 }
 0x16e   :  { %v1723_v20 = vsel %vm1721_vm7, %v1710_v14, %v1712_v18  ;;  %v1722_v21 = vsel %vm1721_vm7, %v1708_v19, %v1710_v14  ;;  %2642 = vmatmul.mubr.msk.f32.vlgmr.msra.gmra.mrb[2].mxu1 %vm218_vm2, %v1448_v7  ;;  %v2489_v7 = vrot.slane %v2476_v8, %v2488_v10 }
 0x16f   :  { %2646 = vmatprep.subr.msk.mxu0 %vm222_vm1, %v1723_v20  ;;  %1878 = vmatprep.mubr.f32.mxu1 %v3021_v0 }
 0x170   :  { %2647 = vmatpush1.msk.msra.mxu0 %vm222_vm1, %v1722_v21 }
 0x171   :  { %v1718_v23 = vpop.permute.xlu0 %1717  ;;  %v1720_v24 = vpop.permute.xlu1 %1719  ;;  %2648 = vmatmul.mubr.msk.f32.vlgmr.msra.gmra.mrb[0].mxu0 %vm218_vm2, %v1706_v22 }
 0x172   :  { %v1727_v25 = vsel %vm1721_vm7, %v1718_v23, %v1720_v24  ;;  %1949 = vmatprep.mubr.f32.mxu0 %v3021_v0 }
 0x173   :  { %2652 = vmatprep.subr.msk.mxu0 %vm222_vm1, %v1727_v25 }
 0x175   :  { %v1714_v26 = vpop.permute.xlu0 %1713  ;;  %v1716_v27 = vpop.permute.xlu1 %1715 }
 0x176   :  { %v1724_v28 = vsel %vm1721_vm7, %v1712_v18, %v1714_v26  ;;  %v1725_v29 = vsel %vm1721_vm7, %v1714_v26, %v1716_v27  ;;  %v1726_v30 = vsel %vm1721_vm7, %v1716_v27, %v1718_v23  ;;  %v2500_v18 = vsub.s32 5, %v2479_v63 }
 0x177   :  { %2649 = vmatprep.subr.msk.mxu1 %vm222_vm1, %v1725_v29  ;;  %2653 = vmatpush1.msk.msra.mxu0 %vm222_vm1, %v1726_v30  ;;  %v2497_v27 = vrot.slane %v2476_v8, %v2496_v15 }
 0x178   :  { %2650 = vmatpush1.msk.msra.mxu1 %vm222_vm1, %v1724_v28  ;;  %2654 = vmatmul.mubr.msk.f32.vlgmr.msra.gmra.mrb[2].mxu0 %vm218_vm2, %v1706_v22 }
 0x179   :  { %v1967_v31 = vpop.permute.xlu0 %1966  ;;  %v1969_v32 = vpop.permute.xlu1 %1968  ;;  %2651 = vmatmul.mubr.msk.f32.vlgmr.msra.gmra.mrb[2].mxu1 %vm218_vm2, %v1706_v22  ;;  %2064 = vmatprep.mubr.f32.mxu0 %v3021_v0 }
 0x17a   :  { %v1980_v33 = vsel %vm1978_vm8, %v1967_v31, %v1969_v32  ;;  %2135 = vmatprep.mubr.f32.mxu1 %v3021_v0 }
 0x17b   :  { %2655 = vmatprep.subr.msk.mxu0 %vm222_vm1, %v1980_v33 }
 0x17d   :  { %v1965_v34 = vpop.permute.xlu0 %1964  ;;  %v1975_v35 = vpop.permute.xlu1 %1974 }
 0x17e   :  { %v1979_v37 = vsel %vm1978_vm8, %v1965_v34, %v1967_v31 }
 0x17f   :  { %2656 = vmatpush1.msk.msra.mxu0 %vm222_vm1, %v1979_v37 }
 0x180   :  { %2657 = vmatmul.mubr.msk.f32.vlgmr.msra.gmra.mrb[0].mxu0 %vm218_vm2, %v1963_v36 }
 0x181   :  { %v1977_v38 = vpop.permute.xlu0 %1976  ;;  %v1971_v39 = vpop.permute.xlu1 %1970  ;;  %2206 = vmatprep.mubr.f32.mxu0 %v3021_v0 }
 0x182   :  { %v1984_v40 = vsel %vm1978_vm8, %v1975_v35, %v1977_v38  ;;  %v1981_v45 = vsel %vm1978_vm8, %v1969_v32, %v1971_v39  ;;  %v2501_v32 = vrot.slane %v2476_v8, %v2500_v18 }
 0x183   :  { %2661 = vmatprep.subr.msk.mxu0 %vm222_vm1, %v1984_v40 }
 0x185   :  { %v1973_v41 = vpop.permute.xlu0 %1972  ;;  %v2224_v42 = vpop.permute.xlu1 %2223 }
 0x186   :  { %v1982_v43 = vsel %vm1978_vm8, %v1971_v39, %v1973_v41  ;;  %v1983_v44 = vsel %vm1978_vm8, %v1973_v41, %v1975_v35 }
 0x187   :  { %2658 = vmatprep.subr.msk.mxu1 %vm222_vm1, %v1982_v43  ;;  %2662 = vmatpush1.msk.msra.mxu0 %vm222_vm1, %v1983_v44 }
 0x188   :  { %2659 = vmatpush1.msk.msra.mxu1 %vm222_vm1, %v1981_v45  ;;  %2663 = vmatmul.mubr.msk.f32.vlgmr.msra.gmra.mrb[2].mxu0 %vm218_vm2, %v1963_v36 }
 0x189   :  { %v2226_v46 = vpop.permute.xlu0 %2225  ;;  %2660 = vmatmul.mubr.msk.f32.vlgmr.msra.gmra.mrb[2].mxu1 %vm218_vm2, %v1963_v36  ;;  %v2222_v47 = vpop.permute.xlu1 %2221  ;;  %2321 = vmatprep.mubr.f32.mxu0 %v3021_v0 }
 0x18a   :  { %v2237_v48 = vsel %vm2235_vm9, %v2224_v42, %v2226_v46  ;;  %v2236_v49 = vsel %vm2235_vm9, %v2222_v47, %v2224_v42  ;;  %2392 = vmatprep.mubr.f32.mxu1 %v3021_v0 }
 0x18b   :  { %2664 = vmatprep.subr.msk.mxu0 %vm222_vm1, %v2237_v48 }
 0x18c   :  { %2665 = vmatpush1.msk.msra.mxu0 %vm222_vm1, %v2236_v49 }
 0x18d   :  { %v2228_v51 = vpop.permute.xlu0 %2227  ;;  %2666 = vmatmul.mubr.msk.f32.vlgmr.msra.gmra.mrb[0].mxu0 %vm218_vm2, %v2220_v50  ;;  %v2230_v52 = vpop.permute.xlu1 %2229 }
 0x18e   :  { %v2238_v53 = vsel %vm2235_vm9, %v2226_v46, %v2228_v51  ;;  %v2239_v54 = vsel %vm2235_vm9, %v2228_v51, %v2230_v52  ;;  %2463 = vmatprep.mubr.f32.mxu0 %v3021_v0 }
 0x18f   :  { %2667 = vmatprep.subr.msk.mxu1 %vm222_vm1, %v2239_v54 }
 0x190   :  { %2668 = vmatpush1.msk.msra.mxu1 %vm222_vm1, %v2238_v53 }
 0x191   :  { %v2232_v55 = vpop.permute.xlu0 %2231  ;;  %2669 = vmatmul.mubr.msk.f32.vlgmr.msra.gmra.mrb[2].mxu1 %vm218_vm2, %v2220_v50  ;;  %v2234_v56 = vpop.permute.xlu1 %2233 }
 0x192   :  { %v2240_v57 = vsel %vm2235_vm9, %v2230_v52, %v2232_v55  ;;  %v2241_v58 = vsel %vm2235_vm9, %v2232_v55, %v2234_v56 }
 0x193   :  { %2670 = vmatprep.subr.msk.mxu0 %vm222_vm1, %v2241_v58 }
 0x194   :  { %2671 = vmatpush1.msk.msra.mxu0 %vm222_vm1, %v2240_v57 }
 0x195   :  { %2672 = vmatmul.mubr.msk.f32.vlgmr.msra.gmra.mrb[2].mxu0 %vm218_vm2, %v2220_v50 }
 0x20c   :  { %v550_v59 = vpop.f32.mrb[0].mxu1 }
 0x20d   :  { %v552_v0 = vpop.f32.mrb[1].mxu1 }
 0x218   :  { %v692_v60 = vpop.f32.mrb[4].mxu1 }
 0x219   :  { %v694_v61 = vpop.f32.mrb[5].mxu1 }
 0x260   :  { %v2323_v1 = vpop.f32.mrb[0].mxu0 }
 0x261   :  { %v2673_v4 = vadd.f32 %v2323_v1, %v550_v59  ;;  %v2325_v5 = vpop.f32.mrb[1].mxu0 }
 0x262   :  { %v2674_v6 = vadd.f32 %v2325_v5, %v552_v0 }
 0x263   :  { %v2508_v14 = vmul.f32 %v2673_v4, %v2481_v11 }
 0x264   :  { %v2509_v16 = vmul.f32 %v2674_v6, %v2485_v12  ;;  %v2394_v17 = vpop.f32.mrb[2].mxu1 }
 0x265   :  { %v2529_v19 = vmul.f32 %v2508_v14, %v2508_v14  ;;  %v2510_v20 = vmul.f32 %v2489_v7, %v2394_v17  ;;  %v2396_v21 = vpop.f32.mrb[3].mxu1 }
 0x266   :  { %v2520_v22 = vcombine.low %v2508_v14, %v2509_v16  ;;  %v2531_v23 = vmul.f32 %v2509_v16, %v2509_v16  ;;  %v2530_v24 = vadd.f32 %v2509_v16, %v2508_v14  ;;  %v2511_v25 = vmul.f32 %v2493_v13, %v2396_v21 }
 0x267   :  { %v2534_v26 = vmul.f32 %v2510_v20, %v2510_v20 }
 0x268   :  { %2526 = vst [vmem:[#allocation17] sm:$0xff] %v2520_v22  ;;  %v2532_v28 = vadd.f32 %v2531_v23, %v2529_v19  ;;  %v2533_v29 = vadd.f32 %v2530_v24, %v2510_v20  ;;  %v2521_v30 = vcombine.low %v2510_v20, %v2511_v25  ;;  %v2465_v31 = vpop.f32.mrb[2].mxu0  ;;  %v2537_v37 = vmul.f32 %v2511_v25, %v2511_v25 }
 0x269   :  { %v2675_v33 = vadd.f32 %v2465_v31, %v692_v60  ;;  %v2467_v34 = vpop.f32.mrb[3].mxu0 }
 0x26a   :  { %v2535_v35 = vadd.f32 %v2534_v26, %v2532_v28  ;;  %v2536_v36 = vadd.f32 %v2533_v29, %v2511_v25  ;;  %2527 = vst [vmem:[#allocation17 + $0x8] sm:$0xff] %v2521_v30  ;;  %v2676_v38 = vadd.f32 %v2467_v34, %v694_v61 }
 0x26b   :  { %v2512_v39 = vmul.f32 %v2675_v33, %v2497_v27 }
 0x26c   :  { %v2538_v40 = vadd.f32 %v2537_v37, %v2535_v35  ;;  %v2513_v41 = vmul.f32 %v2676_v38, %v2501_v32 }
 0x26d   :  { %v2539_v42 = vadd.f32 %v2536_v36, %v2512_v39  ;;  %v2540_v43 = vmul.f32 %v2512_v39, %v2512_v39 }
 0x26e   :  { %v2522_v44 = vcombine.low %v2512_v39, %v2513_v41  ;;  %v2543_v45 = vmul.f32 %v2513_v41, %v2513_v41 }
 0x26f   :  { %v2541_v46 = vadd.f32 %v2540_v43, %v2538_v40  ;;  %v2542_v47 = vadd.f32 %v2539_v42, %v2513_v41 }
 0x270   :  { %2528 = vst [vmem:[#allocation17 + $0x10] sm:$0xff] %v2522_v44 }
 0x271   :  { %v2544_v48 = vadd.f32 %v2543_v45, %v2541_v46  ;;  %v2545_v49 = vsel %vm222_vm1, %v2542_v47, 0.0 }
 0x272   :  { %2963 = shalt.err (!%p2960_p4)
}
 0x273   :  { %s2964_s21 = scalar_lea.hbm %s3481_s9, 384 }
 0x274   :  { %p2965_p5 = scmp.ne.s32.totalorder %s3481_s9, %s2964_s21  ;;  %p2968_p6 = scmp.lt.u32.totalorder %s2964_s21, %s3481_s9 }
 0x276   :  { %p2970_p7 = pnand %p2968_p6, %p2965_p5 }
 0x278   :  { %2973 = shalt.err (!%p2970_p7)
}
 0x279   :  { %2558 = dma.vmem_to_hbm [thread:$0]  %s2556_s18, 384, %s3481_s9, [#allocation4]   ;;  %2547 = vst [vmem:[#allocation18] sm:$0xff] %v2545_v49  ;;  %v2546_v50 = vsel %vm222_vm1, %v2544_v48, 0.0 }
 0x27a   :  { %2548 = vst [vmem:[#allocation18 + $0x8] sm:$0xff] %v2546_v50  ;;  %s2974_s2 = scalar_lea.vmem %s3439_s14, 256  ;;  %p2979_p9 = scmp.lt.s32.totalorder %s3439_s14, %s3439_s14 }
 0x27b   :  { %p2975_p8 = scmp.ne.s32.totalorder %s3439_s14, %s2974_s2  ;;  %p2980_p10 = scmp.lt.s32.totalorder %s2974_s2, %s2974_s2 }
 0x27d   :  { %p2981_p11 = por %p2980_p10, %p2979_p9 }
 0x27f   :  { %p2982_p12 = pnand %p2981_p11, %p2975_p8 }
 0x281   :  { %2985 = shalt.err (!%p2982_p12)
}
 0x282   :  { %s2986_s11 = scalar_lea.hbm %s3482_s10, 256 }
 0x283   :  { %p2987_p13 = scmp.ne.s32.totalorder %s3482_s10, %s2986_s11  ;;  %p2990_p0 = scmp.lt.u32.totalorder %s2986_s11, %s3482_s10 }
 0x285   :  { %p2992_p1 = pnand %p2990_p0, %p2987_p13 }
 0x287   :  { %2995 = shalt.err (!%p2992_p1)
}
 0x288   :  { %s3032_s26 = smov 128   ;;  %s3033_s8 = smov 8  }
 0x289   :  { %2570 = dma.vmem_to_hbm [thread:$0]  %s3439_s14, 256, %s3482_s10, [#allocation19], %s3032_s26, %s3032_s26, %s3033_s8  }
 0x28a   :  { %3006 = dma.done.wait [#allocation4], 384  }
 0x28b   :  { %3007 = vsyncadd [#allocation4], 4294966912 }
 0x28c   :  { %3008 = dma.done.wait [#allocation19], 256  }
 0x28d   :  { %3009 = vsyncadd [#allocation19], 4294967040 }
 0x28e   :  { %2577 = vsyncpa [#allocation3], 1 }
 0x28f   :  { %2578 = vsyncpa [#allocation6], 1 }
 0x290   :  { %2579 = vsyncpa [#allocation9], 1 }
 0x291   :  { %2580 = vsyncpa [#allocation12], 1 }
 0x292   :  { %2581 = vsyncpa [#allocation15], 1 }
 0x293   :  { %2582 = vsyncpa [#allocation4], 1 }
 0x294   :  { %2583 = vsyncpa [#allocation19], 1 }

// kernel: resblock_forward.4
= control target key start
LH: loop header
LB: loop body
LE: loop exit
PB: predicated region body
PF: predicated region fallthrough
CT: control target
= control target key end

     0   :  { %16 = vsyncpa [#allocation3], 0  ;;  %s3661_s0 = inlined_call_operand.hbm [shape: f32[4,768], index: 0, kind: input, shape index: {}, may-alias: {0,1,2}]   ;;  %s3662_s1 = inlined_call_operand.hbm [shape: f32[4,768], index: 1, kind: input, shape index: {}, may-alias: {0,1,2}]   ;;  %s3663_s2 = inlined_call_operand.hbm [shape: f32[4,768], index: 2, kind: input, shape index: {}, may-alias: {0,1,2}]   ;;  %s3664_s3 = inlined_call_operand.hbm [shape: f32[1,768], index: 3, kind: input, shape index: {}, may-alias: {3,4,5}]   ;;  %s3665_s4 = inlined_call_operand.hbm [shape: f32[1,768], index: 4, kind: input, shape index: {}, may-alias: {3,4,5}]   ;;  %s3666_s5 = inlined_call_operand.hbm [shape: f32[1,768], index: 5, kind: input, shape index: {}, may-alias: {3,4,5}]   ;;  %s3667_s6 = inlined_call_operand.hbm [shape: f32[9,4,4], index: 6, kind: input, shape index: {}]   ;;  %s3668_s7 = inlined_call_operand.hbm [shape: f32[4,1], index: 7, kind: input, shape index: {}]   ;;  %s3669_s8 = inlined_call_operand.hbm [shape: f32[4,1], index: 8, kind: input, shape index: {}]   ;;  %s3670_s9 = inlined_call_operand.hbm [shape: f32[4,768], index: 9, kind: output, shape index: {0}]   ;;  %s3671_s10 = inlined_call_operand.hbm [shape: f32[1,16,128], index: 10, kind: output, shape index: {1}]  }
   0x1   :  { %17 = vsyncpa [#allocation6], 0 }
   0x2   :  { %18 = vsyncpa [#allocation9], 0 }
   0x3   :  { %19 = vsyncpa [#allocation12], 0 }
   0x4   :  { %20 = vsyncpa [#allocation15], 0 }
   0x5   :  { %21 = vsyncpa [#allocation4], 0 }
   0x6   :  { %22 = vsyncpa [#allocation19], 0  ;;  %s3123_s13 = smov [#allocation5]   ;;  %s3124_s15 = smov [#allocation8]  }
   0x7   :  { %s45_s14 = sshll.u32 %s3123_s13, 4  ;;  %s77_s16 = sshll.u32 %s3124_s15, 4  ;;  %s46_s14 = int_to_ptr.vmem [resolvable:$true] %s45_s14  ;;  %s3203_s16 = int_to_ptr.vmem [resolvable:$true] %s77_s16 }
   0x8   :  { %s2861_s19 = scalar_lea.hbm %s3662_s1, 384 }
   0x9   :  { %p2862_p0 = scmp.ne.s32.totalorder %s3662_s1, %s2861_s19  ;;  %p2865_p1 = scmp.lt.u32.totalorder %s2861_s19, %s3662_s1 }
   0xb   :  { %p2867_p2 = pnand %p2865_p1, %p2862_p0 }
   0xd   :  { %2870 = shalt.err (!%p2867_p2)
}
   0xe   :  { %s2871_s24 = scalar_lea.vmem %s46_s14, 384  ;;  %p2876_p4 = scmp.lt.s32.totalorder %s46_s14, %s46_s14 }
   0xf   :  { %p2872_p3 = scmp.ne.s32.totalorder %s46_s14, %s2871_s24  ;;  %p2877_p5 = scmp.lt.s32.totalorder %s2871_s24, %s2871_s24 }
  0x11   :  { %p2878_p6 = por %p2877_p5, %p2876_p4 }
  0x13   :  { %p2879_p7 = pnand %p2878_p6, %p2872_p3 }
  0x15   :  { %2882 = shalt.err (!%p2879_p7)
}
  0x16   :  { %48 = dma.hbm_to_vmem [thread:$0]  %s3662_s1, 384, %s46_s14, [#allocation6]  }
  0x17   :  { %s2883_s29 = scalar_lea.hbm %s3664_s3, 16  ;;  %s2885_s15 = scalar_lea.hbm %s3664_s3, 96 }
  0x18   :  { %p2884_p8 = scmp.ne.s32.totalorder %s3664_s3, %s2883_s29  ;;  %p2886_p9 = scmp.lt.u32.totalorder %s2885_s15, %s2883_s29 }
  0x19   :  { %p2887_p10 = scmp.lt.u32.totalorder %s2883_s29, %s3664_s3 }
  0x1b   :  { %p2888_p11 = por %p2887_p10, %p2886_p9 }
  0x1d   :  { %p2889_p12 = pnand %p2888_p11, %p2884_p8 }
  0x1f   :  { %2892 = shalt.err (!%p2889_p12)
}
  0x20   :  { %s2893_s1 = scalar_lea.vmem %s3203_s16, 16  ;;  %s2897_s14 = scalar_lea.vmem %s3203_s16, 32 }
  0x21   :  { %p2894_p13 = scmp.ne.s32.totalorder %s3203_s16, %s2893_s1  ;;  %p2898_p0 = scmp.lt.s32.totalorder %s3203_s16, %s3203_s16 }
  0x22   :  { %p2899_p1 = scmp.lt.s32.totalorder %s2897_s14, %s2893_s1 }
  0x24   :  { %p2900_p2 = por %p2899_p1, %p2898_p0 }
  0x26   :  { %p2901_p3 = pnand %p2900_p2, %p2894_p13 }
  0x28   :  { %2904 = shalt.err (!%p2901_p3)
}
  0x29   :  { %80 = dma.hbm_to_vmem [thread:$0]  %s3664_s3, 16, %s3203_s16, [#allocation9]  }
  0x2a   :  { %s101_s23 = scalar_lea.hbm %s3666_s5, 80  ;;  %s3125_s24 = smov [#allocation11]  }
  0x2b   :  { %s103_s25 = sshll.u32 %s3125_s24, 4  ;;  %s3126_s26 = smov [#allocation14]   ;;  %s104_s25 = int_to_ptr.vmem [resolvable:$true] %s103_s25 }
  0x2c   :  { %s125_s27 = sshll.u32 %s3126_s26, 4  ;;  %s2929_s30 = scalar_lea.hbm %s3666_s5, 96  ;;  %s126_s27 = int_to_ptr.vmem [resolvable:$true] %s125_s27 }
  0x2d   :  { %p2906_p4 = scmp.ne.s32.totalorder %s101_s23, %s2929_s30  ;;  %p2908_p5 = scmp.lt.u32.totalorder %s101_s23, %s3666_s5 }
  0x2e   :  { %p2909_p6 = scmp.lt.u32.totalorder %s2929_s30, %s2929_s30  ;;  %p2911_p8 = scmp.lt.u32.totalorder %s2929_s30, %s101_s23 }
  0x30   :  { %p2910_p7 = por %p2909_p6, %p2908_p5 }
  0x32   :  { %p2912_p9 = por %p2911_p8, %p2910_p7 }
  0x34   :  { %p2913_p10 = pnand %p2912_p9, %p2906_p4 }
  0x36   :  { %2916 = shalt.err (!%p2913_p10)
}
  0x37   :  { %s2917_s3 = scalar_lea.vmem %s104_s25, 16  ;;  %s2921_s16 = scalar_lea.vmem %s104_s25, 32 }
  0x38   :  { %p2918_p11 = scmp.ne.s32.totalorder %s104_s25, %s2917_s3  ;;  %p2922_p12 = scmp.lt.s32.totalorder %s104_s25, %s104_s25 }
  0x39   :  { %p2923_p13 = scmp.lt.s32.totalorder %s2921_s16, %s2917_s3 }
  0x3b   :  { %p2924_p0 = por %p2923_p13, %p2922_p12 }
  0x3d   :  { %p2925_p1 = pnand %p2924_p0, %p2918_p11 }
  0x3f   :  { %2928 = shalt.err (!%p2925_p1)
}
  0x40   :  { %106 = dma.hbm_to_vmem [thread:$0]  %s101_s23, 16, %s104_s25, [#allocation12]  }
  0x41   :  { %s2930_s5 = scalar_lea.hbm %s3668_s7, 64 }
  0x42   :  { %p2931_p2 = scmp.ne.s32.totalorder %s3668_s7, %s2930_s5  ;;  %p2934_p3 = scmp.lt.u32.totalorder %s2930_s5, %s3668_s7 }
  0x44   :  { %p2936_p4 = pnand %p2934_p3, %p2931_p2 }
  0x46   :  { %2939 = shalt.err (!%p2936_p4)
}
  0x47   :  { %s2940_s19 = scalar_lea.vmem %s126_s27, 64  ;;  %p2945_p6 = scmp.lt.s32.totalorder %s126_s27, %s126_s27 }
  0x48   :  { %p2941_p5 = scmp.ne.s32.totalorder %s126_s27, %s2940_s19  ;;  %p2946_p7 = scmp.lt.s32.totalorder %s2940_s19, %s2940_s19 }
  0x4a   :  { %p2947_p8 = por %p2946_p7, %p2945_p6 }
  0x4c   :  { %p2948_p9 = pnand %p2947_p8, %p2941_p5 }
  0x4e   :  { %2951 = shalt.err (!%p2948_p9)
}
  0x4f   :  { %128 = dma.hbm_to_vmem [thread:$0]  %s3668_s7, 64, %s126_s27, [#allocation15]  }
  0x50   :  { %s3127_s22 = smov [#allocation2]   ;;  %s3262_s26 = scalar_lea.hbm %s3663_s2, 320 }
  0x51   :  { %s35_s23 = sshll.u32 %s3127_s22, 4  ;;  %s2952_s30 = scalar_lea.hbm %s3661_s0, 64  ;;  %s36_s23 = int_to_ptr.vmem [resolvable:$true] %s35_s23 }
  0x52   :  { %p2953_p10 = scmp.ne.s32.totalorder %s3661_s0, %s2952_s30  ;;  %s2954_s7 = scalar_lea.hbm %s3661_s0, 384 }
  0x53   :  { %p2955_p11 = scmp.lt.u32.totalorder %s2954_s7, %s2952_s30  ;;  %p2956_p12 = scmp.lt.u32.totalorder %s2952_s30, %s3661_s0 }
  0x55   :  { %p2957_p13 = por %p2956_p12, %p2955_p11 }
  0x57   :  { %p2958_p0 = pnand %p2957_p13, %p2953_p10 }
  0x59   :  { %2961 = shalt.err (!%p2958_p0)
}
  0x5a   :  { %s2962_s15 = scalar_lea.vmem %s36_s23, 64  ;;  %p2967_p2 = scmp.lt.s32.totalorder %s36_s23, %s36_s23 }
  0x5b   :  { %p2963_p1 = scmp.ne.s32.totalorder %s36_s23, %s2962_s15  ;;  %p2968_p3 = scmp.lt.s32.totalorder %s2962_s15, %s2962_s15 }
  0x5d   :  { %p2969_p4 = por %p2968_p3, %p2967_p2 }
  0x5f   :  { %p2970_p5 = pnand %p2969_p4, %p2963_p1 }
  0x61   :  { %2973 = shalt.err (!%p2970_p5)
}
  0x62   :  { %38 = dma.hbm_to_vmem [thread:$0]  %s3661_s0, 64, %s36_s23, [#allocation3]  }
  0x63   :  { %s3128_s18 = smov [#allocation7]   ;;  %s3129_s14 = smov [#allocation10]  }
  0x64   :  { %s61_s1 = sshll.u32 %s3128_s18, 4  ;;  %s87_s19 = sshll.u32 %s3129_s14, 4  ;;  %s62_s1 = int_to_ptr.vmem [resolvable:$true] %s61_s1  ;;  %s88_s19 = int_to_ptr.vmem [resolvable:$true] %s87_s19 }
  0x65   :  { %s2998_s22 = scalar_lea.hbm %s3663_s2, 384  ;;  %p2977_p7 = scmp.lt.u32.totalorder %s3262_s26, %s3663_s2 }
  0x66   :  { %p2975_p6 = scmp.ne.s32.totalorder %s3262_s26, %s2998_s22  ;;  %p2978_p8 = scmp.lt.u32.totalorder %s2998_s22, %s2998_s22 }
  0x67   :  { %p2980_p10 = scmp.lt.u32.totalorder %s2998_s22, %s3262_s26 }
  0x68   :  { %p2979_p9 = por %p2978_p8, %p2977_p7 }
  0x6a   :  { %p2981_p11 = por %p2980_p10, %p2979_p9 }
  0x6c   :  { %p2982_p12 = pnand %p2981_p11, %p2975_p6 }
  0x6e   :  { %2985 = shalt.err (!%p2982_p12)
}
  0x6f   :  { %s2986_s0 = scalar_lea.vmem %s62_s1, 64  ;;  %p2991_p0 = scmp.lt.s32.totalorder %s62_s1, %s62_s1 }
  0x70   :  { %p2987_p13 = scmp.ne.s32.totalorder %s62_s1, %s2986_s0  ;;  %p2992_p1 = scmp.lt.s32.totalorder %s2986_s0, %s2986_s0 }
  0x72   :  { %p2993_p2 = por %p2992_p1, %p2991_p0 }
  0x74   :  { %p2994_p3 = pnand %p2993_p2, %p2987_p13 }
  0x76   :  { %2997 = shalt.err (!%p2994_p3)
}
  0x77   :  { %64 = dma.hbm_to_vmem [thread:$0]  %s3262_s26, 64, %s62_s1, [#allocation6]  }
  0x78   :  { %s2999_s2 = scalar_lea.hbm %s3665_s4, 96 }
  0x79   :  { %p3000_p4 = scmp.ne.s32.totalorder %s3665_s4, %s2999_s2  ;;  %p3003_p5 = scmp.lt.u32.totalorder %s2999_s2, %s3665_s4 }
  0x7b   :  { %p3005_p6 = pnand %p3003_p5, %p3000_p4 }
  0x7d   :  { %3008 = shalt.err (!%p3005_p6)
}
  0x7e   :  { %s3009_s3 = scalar_lea.vmem %s88_s19, 96  ;;  %p3014_p8 = scmp.lt.s32.totalorder %s88_s19, %s88_s19 }
  0x7f   :  { %p3010_p7 = scmp.ne.s32.totalorder %s88_s19, %s3009_s3  ;;  %p3015_p9 = scmp.lt.s32.totalorder %s3009_s3, %s3009_s3 }
  0x81   :  { %p3016_p10 = por %p3015_p9, %p3014_p8 }
  0x83   :  { %p3017_p11 = pnand %p3016_p10, %p3010_p7 }
  0x85   :  { %3020 = shalt.err (!%p3017_p11)
}
  0x86   :  { %90 = dma.hbm_to_vmem [thread:$0]  %s3665_s4, 96, %s88_s19, [#allocation9]  }
  0x87   :  { %s3130_s7 = smov [#allocation13]   ;;  %s3021_s5 = scalar_lea.hbm %s3667_s6, 576 }
  0x88   :  { %s112_s27 = sshll.u32 %s3130_s7, 4  ;;  %p3022_p12 = scmp.ne.s32.totalorder %s3667_s6, %s3021_s5  ;;  %s113_s27 = int_to_ptr.vmem [resolvable:$true] %s112_s27 }
  0x89   :  { %p3025_p13 = scmp.lt.u32.totalorder %s3021_s5, %s3667_s6 }
  0x8b   :  { %p3027_p0 = pnand %p3025_p13, %p3022_p12 }
  0x8d   :  { %3030 = shalt.err (!%p3027_p0)
}
  0x8e   :  { %s3031_s20 = scalar_lea.vmem %s113_s27, 576  ;;  %p3036_p2 = scmp.lt.s32.totalorder %s113_s27, %s113_s27 }
  0x8f   :  { %p3032_p1 = scmp.ne.s32.totalorder %s113_s27, %s3031_s20  ;;  %p3037_p3 = scmp.lt.s32.totalorder %s3031_s20, %s3031_s20 }
  0x91   :  { %p3038_p4 = por %p3037_p3, %p3036_p2 }
  0x93   :  { %p3039_p5 = pnand %p3038_p4, %p3032_p1 }
  0x95   :  { %3042 = shalt.err (!%p3039_p5)
}
  0x96   :  { %s3131_s4 = smov 64   ;;  %s3132_s19 = smov 4  }
  0x97   :  { %118 = dma.hbm_to_vmem [thread:$0]  %s3667_s6, 576, %s113_s27, [#allocation12], %s3131_s4, %s3131_s4, %s3132_s19  }
  0x98   :  { %s3133_s24 = smov [#allocation16]   ;;  %s3043_s28 = scalar_lea.hbm %s3669_s8, 64 }
  0x99   :  { %s135_s25 = sshll.u32 %s3133_s24, 4  ;;  %p3044_p6 = scmp.ne.s32.totalorder %s3669_s8, %s3043_s28  ;;  %s136_s25 = int_to_ptr.vmem [resolvable:$true] %s135_s25 }
  0x9a   :  { %p3047_p7 = scmp.lt.u32.totalorder %s3043_s28, %s3669_s8 }
  0x9c   :  { %p3049_p8 = pnand %p3047_p7, %p3044_p6 }
  0x9e   :  { %3052 = shalt.err (!%p3049_p8)
}
  0x9f   :  { %s3053_s12 = scalar_lea.vmem %s136_s25, 64  ;;  %p3058_p10 = scmp.lt.s32.totalorder %s136_s25, %s136_s25 }
  0xa0   :  { %p3054_p9 = scmp.ne.s32.totalorder %s136_s25, %s3053_s12  ;;  %p3059_p11 = scmp.lt.s32.totalorder %s3053_s12, %s3053_s12 }
  0xa2   :  { %p3060_p12 = por %p3059_p11, %p3058_p10 }
  0xa4   :  { %p3061_p13 = pnand %p3060_p12, %p3054_p9 }
  0xa6   :  { %3064 = shalt.err (!%p3061_p13)
}
  0xa7   :  { %138 = dma.hbm_to_vmem [thread:$0]  %s3669_s8, 64, %s136_s25, [#allocation15]  }
  0xa8   :  { %3109 = dma.done.wait [#allocation3], 64  }
  0xa9   :  { %3110 = vsyncadd [#allocation3], 4294967232 }
  0xaa   :  { %3111 = dma.done.wait [#allocation6], 448  }
  0xab   :  { %3112 = vsyncadd [#allocation6], 4294966848 }
  0xac   :  { %3113 = dma.done.wait [#allocation9], 112  }
  0xad   :  { %3114 = vsyncadd [#allocation9], 4294967184 }
  0xae   :  { %3115 = dma.done.wait [#allocation12], 592  }
  0xaf   :  { %3116 = vsyncadd [#allocation12], 4294966704 }
  0xb0   :  { %3117 = dma.done.wait [#allocation15], 128  }
  0xb1   :  { %3118 = vsyncadd [#allocation15], 4294967168  ;;  %v3134_v0 = vmov 0   ;;  %v238_v1 = vld [vmem:[#allocation14] sm:$0xf]  ;;  %v200_v3 = vlaneseq  ;;  %v183_v16 = vld [vmem:[#allocation5] sm:$0xff] }
  0xb2   :  { %2857 = vset.pattern.permute.xlu0 %v3134_v0  ;;  %v252_v2 = vld [vmem:[#allocation16] sm:$0xf]  ;;  %v198_v5 = vld [vmem:[#allocation11] sm:$0x1]  ;;  %v197_v9 = vld [vmem:[#allocation10] sm:$0x3f]  ;;  %v190_v20 = vcombine.high %v183_v16, %v183_v16 }
  0xb3   :  { %241 = vperm.xlu0 %2857, %v238_v1   ;;  %v201_v4 = vshrl.u32 %v200_v3, 7  ;;  %vm237_vm0 = vcmp.gt.f32.partialorder %v198_v5, 0.0  ;;  %v196_v13 = vld [vmem:[#allocation8] sm:$0x1]  ;;  %v184_v18 = vld [vmem:[#allocation5 + $0x8] sm:$0xff]  ;;  %v185_v24 = vld [vmem:[#allocation5 + $0x10] sm:$0xff] }
  0xb4   :  { %v3329_v7 = vsel %vm237_vm0, 1, %v3134_v0  ;;  %vm230_vm2 = vcmp.gt.f32.partialorder %v196_v13, 0.0  ;;  %v191_v25 = vcombine.high %v184_v18, %v184_v18  ;;  %v182_v29 = vld [vmem:[#allocation2] sm:$0xf]  ;;  %v192_v34 = vcombine.high %v185_v24, %v185_v24  ;;  %s3135_s8 = smov 18   ;;  %s3137_s26 = smov 19  }
  0xb5   :  { %v3326_v6 = vsub.s32 0, %v201_v4  ;;  %v206_v10 = vsub.s32 1, %v201_v4  ;;  %v214_v11 = vsub.s32 3, %v201_v4  ;;  %v210_v17 = vsub.s32 2, %v201_v4  ;;  %s3138_s16 = smov 17   ;;  %s3139_s7 = smov 1  }
  0xb6   :  { %v222_v19 = vsub.s32 5, %v201_v4  ;;  %v274_v22 = vsel %vm230_vm2, 1, %v3134_v0  ;;  %v218_v28 = vsub.s32 4, %v201_v4  ;;  %v3136_v3 = vmov 0.0   ;;  %s3140_s27 = smov 127   ;;  %s3141_s13 = smov 111  }
  0xb7   :  { %255 = vperm.xlu0 %2857, %v252_v2   ;;  %v313_v8 = vrot.slane %v3329_v7, %v3326_v6  ;;  %v3334_v12 = vrot.slane %v197_v9, %v3326_v6  ;;  %v3336_v14 = vrot.slane %v197_v9, %v206_v10  ;;  %v3338_v15 = vrot.slane %v197_v9, %v214_v11  ;;  %s3142_s15 = smov 110   ;;  %s3143_s5 = smov 109  }
  0xb8   :  { %v3348_v27 = vrot.slane %v197_v9, %v210_v17  ;;  %v3350_v30 = vrot.slane %v197_v9, %v222_v19  ;;  %v285_v32 = vrot.slane %v274_v22, %v3326_v6  ;;  %v3363_v41 = vrot.slane %v197_v9, %v218_v28  ;;  %442 = vmatprep.mubr.f32.mxu1 %v3136_v3  ;;  %v186_v19 = vld [vmem:[#allocation7] sm:$0xf]  ;;  %s3144_s17 = smov [#allocation17]   ;;  %s3145_s1 = smov [#allocation18]  }
  0xb9   :  { %vm231_vm1 = vcmp.gt.f32.partialorder %v3334_v12, 0.0  ;;  %vm232_vm3 = vcmp.gt.f32.partialorder %v3336_v14, 0.0  ;;  %vm234_vm4 = vcmp.gt.f32.partialorder %v3338_v15, 0.0  ;;  %942 = vmatprep.mubr.f32.mxu0 %v3136_v3  ;;  %vm321_vm15 = vcmp.eq.s32.totalorder %v313_v8, 1  ;;  %s2666_s18 = sshll.u32 %s3144_s17, 4  ;;  %s2675_s14 = sshll.u32 %s3145_s1, 4  ;;  %s2667_s18 = int_to_ptr.vmem [resolvable:$true] %s2666_s18  ;;  %s2676_s14 = int_to_ptr.vmem [resolvable:$true] %s2675_s14 }
  0xba   :  { %v275_v21 = vsel %vm231_vm1, 1, %v3134_v0  ;;  %v276_v26 = vsel %vm232_vm3, 1, %v3134_v0  ;;  %v278_v33 = vsel %vm234_vm4, 1, %v3134_v0  ;;  %vm233_vm5 = vcmp.gt.f32.partialorder %v3348_v27, 0.0  ;;  %s3065_s20 = scalar_lea.vmem %s2667_s18, 384  ;;  %p3070_p1 = scmp.lt.s32.totalorder %s2667_s18, %s2667_s18 }
  0xbb   :  { %v289_v31 = vrot.slane %v275_v21, %v3326_v6  ;;  %v293_v37 = vrot.slane %v276_v26, %v3326_v6  ;;  %v301_v44 = vrot.slane %v278_v33, %v3326_v6  ;;  %vm236_vm6 = vcmp.gt.f32.partialorder %v3350_v30, 0.0  ;;  %v332_v26 = vld [vmem:[#allocation13 + $0x4] sm:$0xf]  ;;  %p3066_p0 = scmp.ne.s32.totalorder %s2667_s18, %s3065_s20  ;;  %p3071_p2 = scmp.lt.s32.totalorder %s3065_s20, %s3065_s20 }
  0xbc   :  { %vm3371_vm8 = vcmp.eq.s32.totalorder %v285_v32, 1  ;;  %v277_v51 = vsel %vm233_vm5, 1, %v3134_v0  ;;  %v280_v54 = vsel %vm236_vm6, 1, %v3134_v0  ;;  %vm235_vm10 = vcmp.gt.f32.partialorder %v3363_v41, 0.0 }
  0xbd   :  { %vm315_vm7 = vcmp.eq.s32.totalorder %v289_v31, 1  ;;  %vm3376_vm9 = vcmp.eq.s32.totalorder %v293_v37, 1  ;;  %vm3387_vm11 = vcmp.eq.s32.totalorder %v301_v44, 1  ;;  %v297_v62 = vrot.slane %v277_v51, %v3326_v6  ;;  %p3072_p3 = por %p3071_p2, %p3070_p1 }
  0xbe   :  { %v309_v1 = vrot.slane %v280_v54, %v3326_v6  ;;  %v279_v2 = vsel %vm235_vm10, 1, %v3134_v0  ;;  %vm354_vm0 = vcmask 146432   ;;  %vm365_vm1 = vcmask 1043456  }
  0xbf   :  { %vm317_vm12 = vcmp.eq.s32.totalorder %v297_v62, 1  ;;  %v305_v0 = vrot.slane %v279_v2, %v3326_v6  ;;  %vm361_vm2 = vcmask 31744   ;;  %vm605_vm3 = vcmask 154624   ;;  %p3073_p4 = pnand %p3072_p3, %p3066_p0 }
  0xc0   :  { %vm320_vm13 = vcmp.eq.s32.totalorder %v309_v1, 1  ;;  %vm856_vm4 = vcmask 138240   ;;  %vm1113_vm5 = vcmask 7168   ;;  %vm1607_vm6 = vcmask 1039360  }
  0xc1   :  { %vm319_vm14 = vcmp.eq.s32.totalorder %v305_v0, 1 }
 0x132   :  { %v3345_v23 = vpop.permute.xlu0 %241 }
 0x133   :  { %v245_v35 = vmul.f32 %v3345_v23, %v183_v16  ;;  %v246_v36 = vmul.f32 %v3345_v23, %v190_v20  ;;  %v248_v38 = vmul.f32 %v3345_v23, %v191_v25  ;;  %v244_v40 = vmul.f32 %v3345_v23, %v182_v29 }
 0x134   :  { %v247_v48 = vmul.f32 %v3345_v23, %v184_v18  ;;  %v250_v52 = vmul.f32 %v3345_v23, %v192_v34  ;;  %v249_v63 = vmul.f32 %v3345_v23, %v185_v24  ;;  %v251_v20 = vmul.f32 %v3345_v23, %v186_v19 }
 0x136   :  { %v3359_v39 = vpop.permute.xlu0 %255 }
 0x137   :  { %v259_v42 = vadd.f32 %v3359_v39, %v245_v35  ;;  %v260_v43 = vadd.f32 %v3359_v39, %v246_v36  ;;  %v262_v45 = vadd.f32 %v3359_v39, %v248_v38  ;;  %v258_v46 = vadd.f32 %v3359_v39, %v244_v40 }
 0x138   :  { %v261_v55 = vadd.f32 %v3359_v39, %v247_v48  ;;  %v264_v59 = vadd.f32 %v3359_v39, %v250_v52  ;;  %v263_v4 = vadd.f32 %v3359_v39, %v249_v63  ;;  %v265_v21 = vadd.f32 %v3359_v39, %v251_v20  ;;  %v1098_v20 = vld [vmem:[#allocation13 + $0xc] sm:$0xf] }
 0x139   :  { %v267_v49 = vmax.f32 %v259_v42, 0.0  ;;  %v266_v53 = vmax.f32 %v258_v46, 0.0  ;;  %v268_v56 = vmax.f32 %v260_v43, 0.0  ;;  %v270_v60 = vmax.f32 %v262_v45, 0.0  ;;  %v330_v43 = vld [vmem:[#allocation13] sm:$0xf] }
 0x13a   :  { %v269_v5 = vmax.f32 %v261_v55, 0.0  ;;  %v272_v10 = vmax.f32 %v264_v59, 0.0  ;;  %v271_v13 = vmax.f32 %v263_v4, 0.0  ;;  %v273_v22 = vmax.f32 %v265_v21, 0.0 }
 0x13b   :  { %v3385_v57 = vsel %vm315_vm7, %v267_v49, 0.0  ;;  %v322_v61 = vsel %vm3371_vm8, %v266_v53, 0.0  ;;  %v3404_v9 = vsel %vm3376_vm9, %v268_v56, 0.0  ;;  %v3409_v11 = vsel %vm3387_vm11, %v270_v60, 0.0  ;;  %v841_v53 = vld [vmem:[#allocation13 + $0x8] sm:$0xf] }
 0x13c   :  { %342 = vrot.lane.b32.xlu1 %v3385_v57, %s3135_s8  ;;  %340 = vrot.lane.b32.xlu0 %v322_v61, %s3135_s8  ;;  %v3413_v16 = vsel %vm317_vm12, %v269_v5, 0.0  ;;  %v3416_v17 = vsel %vm320_vm13, %v272_v10, 0.0  ;;  %v3419_v18 = vsel %vm319_vm14, %v271_v13, 0.0  ;;  %v329_v24 = vsel %vm321_vm15, %v273_v22, 0.0 }
 0x13d   :  { %vm1864_vm7 = vcmask 908288   ;;  %vm2121_vm8 = vcmask 900096   ;;  %vm2378_vm9 = vcmask 891904  }
 0x140   :  { %344 = vrot.lane.b32.xlu1 %v3404_v9, %s3135_s8  ;;  %348 = vrot.lane.b32.xlu0 %v3409_v11, %s3135_s8 }
 0x144   :  { %346 = vrot.lane.b32.xlu1 %v3413_v16, %s3135_s8  ;;  %352 = vrot.lane.b32.xlu0 %v3416_v17, %s3135_s8 }
 0x148   :  { %350 = vrot.lane.b32.xlu1 %v3419_v18, %s3135_s8  ;;  %595 = vrot.lane.b32.xlu0 %v3404_v9, %s3137_s26 }
 0x14c   :  { %593 = vrot.lane.b32.xlu1 %v3385_v57, %s3137_s26  ;;  %597 = vrot.lane.b32.xlu0 %v3413_v16, %s3137_s26 }
 0x150   :  { %591 = vrot.lane.b32.xlu1 %v322_v61, %s3137_s26  ;;  %844 = vrot.lane.b32.xlu0 %v3385_v57, %s3138_s16 }
 0x154   :  { %599 = vrot.lane.b32.xlu1 %v3409_v11, %s3137_s26  ;;  %601 = vrot.lane.b32.xlu0 %v3419_v18, %s3137_s26 }
 0x158   :  { %846 = vrot.lane.b32.xlu1 %v3404_v9, %s3138_s16  ;;  %842 = vrot.lane.b32.xlu0 %v322_v61, %s3138_s16 }
 0x15c   :  { %603 = vrot.lane.b32.xlu1 %v3416_v17, %s3137_s26  ;;  %854 = vrot.lane.b32.xlu0 %v3416_v17, %s3138_s16 }
 0x160   :  { %852 = vrot.lane.b32.xlu1 %v3419_v18, %s3138_s16  ;;  %850 = vrot.lane.b32.xlu0 %v3409_v11, %s3138_s16 }
 0x164   :  { %848 = vrot.lane.b32.xlu1 %v3413_v16, %s3138_s16  ;;  %1103 = vrot.lane.b32.xlu0 %v3404_v9, %s3139_s7 }
 0x168   :  { %1101 = vrot.lane.b32.xlu1 %v3385_v57, %s3139_s7  ;;  %1109 = vrot.lane.b32.xlu0 %v3419_v18, %s3139_s7 }
 0x16c   :  { %1099 = vrot.lane.b32.xlu1 %v322_v61, %s3139_s7  ;;  %1105 = vrot.lane.b32.xlu0 %v3413_v16, %s3139_s7 }
 0x170   :  { %1111 = vrot.lane.b32.xlu1 %v3416_v17, %s3139_s7  ;;  %1595 = vrot.lane.b32.xlu0 %v3404_v9, %s3140_s27 }
 0x174   :  { %1107 = vrot.lane.b32.xlu1 %v3409_v11, %s3139_s7  ;;  %1593 = vrot.lane.b32.xlu0 %v3385_v57, %s3140_s27 }
 0x178   :  { %1597 = vrot.lane.b32.xlu1 %v3413_v16, %s3140_s27  ;;  %1605 = vrot.lane.b32.xlu0 %v329_v24, %s3140_s27 }
 0x17c   :  { %1603 = vrot.lane.b32.xlu1 %v3416_v17, %s3140_s27  ;;  %1601 = vrot.lane.b32.xlu0 %v3419_v18, %s3140_s27 }
 0x180   :  { %1599 = vrot.lane.b32.xlu1 %v3409_v11, %s3140_s27  ;;  %1854 = vrot.lane.b32.xlu0 %v3413_v16, %s3141_s13 }
 0x184   :  { %1852 = vrot.lane.b32.xlu1 %v3404_v9, %s3141_s13  ;;  %1860 = vrot.lane.b32.xlu0 %v3416_v17, %s3141_s13 }
 0x188   :  { %1850 = vrot.lane.b32.xlu1 %v3385_v57, %s3141_s13  ;;  %1856 = vrot.lane.b32.xlu0 %v3409_v11, %s3141_s13 }
 0x18c   :  { %1862 = vrot.lane.b32.xlu1 %v329_v24, %s3141_s13  ;;  %2109 = vrot.lane.b32.xlu0 %v3404_v9, %s3142_s15 }
 0x190   :  { %1858 = vrot.lane.b32.xlu1 %v3419_v18, %s3141_s13  ;;  %2107 = vrot.lane.b32.xlu0 %v3385_v57, %s3142_s15 }
 0x194   :  { %2111 = vrot.lane.b32.xlu1 %v3413_v16, %s3142_s15  ;;  %2119 = vrot.lane.b32.xlu0 %v329_v24, %s3142_s15 }
 0x198   :  { %2117 = vrot.lane.b32.xlu1 %v3416_v17, %s3142_s15  ;;  %2115 = vrot.lane.b32.xlu0 %v3419_v18, %s3142_s15 }
 0x19c   :  { %2113 = vrot.lane.b32.xlu1 %v3409_v11, %s3142_s15  ;;  %2368 = vrot.lane.b32.xlu0 %v3413_v16, %s3143_s5 }
 0x1a0   :  { %2366 = vrot.lane.b32.xlu1 %v3404_v9, %s3143_s5  ;;  %2370 = vrot.lane.b32.xlu0 %v3409_v11, %s3143_s5 }
 0x1a4   :  { %2364 = vrot.lane.b32.xlu1 %v3385_v57, %s3143_s5  ;;  %2374 = vrot.lane.b32.xlu0 %v3416_v17, %s3143_s5 }
 0x1a8   :  { %2372 = vrot.lane.b32.xlu1 %v3419_v18, %s3143_s5 }
 0x1ac   :  { %2376 = vrot.lane.b32.xlu1 %v329_v24, %s3143_s5 }
 0x1ae   :  { %v343_v6 = vpop.permute.xlu1 %342  ;;  %v341_v7 = vpop.permute.xlu0 %340 }
 0x1af   :  { %v355_v28 = vsel %vm354_vm0, %v341_v7, %v343_v6 }
 0x1b2   :  { %v345_v8 = vpop.permute.xlu1 %344  ;;  %v349_v23 = vpop.permute.xlu0 %348 }
 0x1b3   :  { %v356_v25 = vsel %vm354_vm0, %v343_v6, %v345_v8 }
 0x1b4   :  { %2703 = vmatprep.subr.msk.mxu1 %vm365_vm1, %v356_v25 }
 0x1b5   :  { %2704 = vmatpush1.msk.msra.mxu1 %vm365_vm1, %v355_v28 }
 0x1b6   :  { %v347_v29 = vpop.permute.xlu1 %346  ;;  %2705 = vmatmul.mubr.msk.f32.vlgmr.msra.gmra.mrb[0].mxu1 %vm361_vm2, %v332_v26  ;;  %v353_v33 = vpop.permute.xlu0 %352 }
 0x1b7   :  { %v357_v31 = vsel %vm354_vm0, %v345_v8, %v347_v29  ;;  %v358_v32 = vsel %vm354_vm0, %v347_v29, %v349_v23  ;;  %513 = vmatprep.mubr.f32.mxu1 %v3136_v3 }
 0x1b8   :  { %2706 = vmatprep.subr.msk.mxu1 %vm365_vm1, %v358_v32  ;;  %v1355_v32 = vld [vmem:[#allocation13 + $0x10] sm:$0xf] }
 0x1b9   :  { %2707 = vmatpush1.msk.msra.mxu1 %vm365_vm1, %v357_v31 }
 0x1ba   :  { %v351_v34 = vpop.permute.xlu1 %350  ;;  %2708 = vmatmul.mubr.msk.f32.vlgmr.msra.gmra.mrb[2].mxu1 %vm361_vm2, %v332_v26  ;;  %v596_v37 = vpop.permute.xlu0 %595 }
 0x1bb   :  { %v359_v35 = vsel %vm354_vm0, %v349_v23, %v351_v34  ;;  %v360_v36 = vsel %vm354_vm0, %v351_v34, %v353_v33  ;;  %584 = vmatprep.mubr.f32.mxu1 %v3136_v3 }
 0x1bc   :  { %2709 = vmatprep.subr.msk.mxu1 %vm365_vm1, %v360_v36 }
 0x1bd   :  { %2710 = vmatpush1.msk.msra.mxu1 %vm365_vm1, %v359_v35 }
 0x1be   :  { %v594_v38 = vpop.permute.xlu1 %593  ;;  %2711 = vmatmul.mubr.msk.f32.vlgmr.msra.gmra.mrb[4].mxu1 %vm361_vm2, %v332_v26  ;;  %v598_v40 = vpop.permute.xlu0 %597 }
 0x1bf   :  { %v607_v39 = vsel %vm605_vm3, %v594_v38, %v596_v37  ;;  %691 = vmatprep.mubr.f32.mxu1 %v3136_v3  ;;  %v608_v49 = vsel %vm605_vm3, %v596_v37, %v598_v40 }
 0x1c0   :  { %2712 = vmatprep.subr.msk.mxu1 %vm365_vm1, %v607_v39 }
 0x1c2   :  { %v592_v42 = vpop.permute.xlu1 %591  ;;  %v845_v45 = vpop.permute.xlu0 %844 }
 0x1c3   :  { %v606_v44 = vsel %vm605_vm3, %v592_v42, %v594_v38 }
 0x1c4   :  { %2713 = vmatpush1.msk.msra.mxu1 %vm365_vm1, %v606_v44 }
 0x1c5   :  { %2714 = vmatmul.mubr.msk.f32.vlgmr.msra.gmra.mrb[0].mxu1 %vm361_vm2, %v330_v43 }
 0x1c6   :  { %v600_v46 = vpop.permute.xlu1 %599  ;;  %762 = vmatprep.mubr.f32.mxu1 %v3136_v3  ;;  %v602_v48 = vpop.permute.xlu0 %601 }
 0x1c7   :  { %v609_v47 = vsel %vm605_vm3, %v598_v40, %v600_v46  ;;  %v610_v59 = vsel %vm605_vm3, %v600_v46, %v602_v48 }
 0x1c8   :  { %2715 = vmatprep.subr.msk.mxu1 %vm365_vm1, %v609_v47 }
 0x1c9   :  { %2716 = vmatpush1.msk.msra.mxu1 %vm365_vm1, %v608_v49 }
 0x1ca   :  { %v847_v50 = vpop.permute.xlu1 %846  ;;  %2717 = vmatmul.mubr.msk.f32.vlgmr.msra.gmra.mrb[2].mxu1 %vm361_vm2, %v330_v43  ;;  %v843_v51 = vpop.permute.xlu0 %842 }
 0x1cb   :  { %v858_v52 = vsel %vm856_vm4, %v845_v45, %v847_v50  ;;  %833 = vmatprep.mubr.f32.mxu1 %v3136_v3  ;;  %v857_v54 = vsel %vm856_vm4, %v843_v51, %v845_v45  ;;  %v1849_v45 = vld [vmem:[#allocation13 + $0x18] sm:$0xf] }
 0x1cc   :  { %2721 = vmatprep.subr.msk.mxu0 %vm365_vm1, %v858_v52 }
 0x1cd   :  { %2722 = vmatpush1.msk.msra.mxu0 %vm365_vm1, %v857_v54 }
 0x1ce   :  { %v604_v55 = vpop.permute.xlu1 %603  ;;  %2723 = vmatmul.mubr.msk.f32.vlgmr.msra.gmra.mrb[0].mxu0 %vm361_vm2, %v841_v53  ;;  %v855_v58 = vpop.permute.xlu0 %854 }
 0x1cf   :  { %v611_v56 = vsel %vm605_vm3, %v602_v48, %v604_v55  ;;  %1084 = vmatprep.mubr.f32.mxu0 %v3136_v3 }
 0x1d0   :  { %2718 = vmatprep.subr.msk.mxu1 %vm365_vm1, %v611_v56 }
 0x1d1   :  { %2719 = vmatpush1.msk.msra.mxu1 %vm365_vm1, %v610_v59 }
 0x1d2   :  { %v853_v60 = vpop.permute.xlu1 %852  ;;  %2720 = vmatmul.mubr.msk.f32.vlgmr.msra.gmra.mrb[4].mxu1 %vm361_vm2, %v330_v43  ;;  %v851_v62 = vpop.permute.xlu0 %850 }
 0x1d3   :  { %v862_v61 = vsel %vm856_vm4, %v853_v60, %v855_v58  ;;  %1013 = vmatprep.mubr.f32.mxu1 %v3136_v3  ;;  %v861_v63 = vsel %vm856_vm4, %v851_v62, %v853_v60  ;;  %v2106_v58 = vld [vmem:[#allocation13 + $0x1c] sm:$0xf] }
 0x1d4   :  { %2727 = vmatprep.subr.msk.mxu0 %vm365_vm1, %v862_v61 }
 0x1d5   :  { %2728 = vmatpush1.msk.msra.mxu0 %vm365_vm1, %v861_v63 }
 0x1d6   :  { %v849_v1 = vpop.permute.xlu1 %848  ;;  %2729 = vmatmul.mubr.msk.f32.vlgmr.msra.gmra.mrb[2].mxu0 %vm361_vm2, %v841_v53  ;;  %v1104_v5 = vpop.permute.xlu0 %1103 }
 0x1d7   :  { %v859_v2 = vsel %vm856_vm4, %v847_v50, %v849_v1  ;;  %v860_v4 = vsel %vm856_vm4, %v849_v1, %v851_v62  ;;  %1199 = vmatprep.mubr.f32.mxu0 %v3136_v3 }
 0x1d8   :  { %2724 = vmatprep.subr.msk.mxu1 %vm365_vm1, %v860_v4 }
 0x1d9   :  { %2725 = vmatpush1.msk.msra.mxu1 %vm365_vm1, %v859_v2 }
 0x1da   :  { %v1102_v10 = vpop.permute.xlu1 %1101  ;;  %2726 = vmatmul.mubr.msk.f32.vlgmr.msra.gmra.mrb[2].mxu1 %vm361_vm2, %v841_v53  ;;  %v1110_v13 = vpop.permute.xlu0 %1109 }
 0x1db   :  { %v1115_v0 = vsel %vm1113_vm5, %v1102_v10, %v1104_v5  ;;  %1270 = vmatprep.mubr.f32.mxu1 %v3136_v3 }
 0x1dc   :  { %2730 = vmatprep.subr.msk.mxu0 %vm365_vm1, %v1115_v0 }
 0x1de   :  { %v1100_v19 = vpop.permute.xlu1 %1099  ;;  %v1106_v22 = vpop.permute.xlu0 %1105 }
 0x1df   :  { %v1114_v21 = vsel %vm1113_vm5, %v1100_v19, %v1102_v10  ;;  %v1116_v28 = vsel %vm1113_vm5, %v1104_v5, %v1106_v22  ;;  %v2363_v19 = vld [vmem:[#allocation13 + $0x20] sm:$0xf] }
 0x1e0   :  { %2731 = vmatpush1.msk.msra.mxu0 %vm365_vm1, %v1114_v21 }
 0x1e1   :  { %2732 = vmatmul.mubr.msk.f32.vlgmr.msra.gmra.mrb[0].mxu0 %vm361_vm2, %v1098_v20 }
 0x1e2   :  { %v1112_v24 = vpop.permute.xlu1 %1111  ;;  %1341 = vmatprep.mubr.f32.mxu0 %v3136_v3  ;;  %v1596_v7 = vpop.permute.xlu0 %1595 }
 0x1e3   :  { %v1119_v6 = vsel %vm1113_vm5, %v1110_v13, %v1112_v24 }
 0x1e4   :  { %2736 = vmatprep.subr.msk.mxu0 %vm365_vm1, %v1119_v6 }
 0x1e6   :  { %v1108_v8 = vpop.permute.xlu1 %1107  ;;  %v1594_v26 = vpop.permute.xlu0 %1593 }
 0x1e7   :  { %v1117_v23 = vsel %vm1113_vm5, %v1106_v22, %v1108_v8  ;;  %v1118_v25 = vsel %vm1113_vm5, %v1108_v8, %v1110_v13 }
 0x1e8   :  { %2733 = vmatprep.subr.msk.mxu1 %vm365_vm1, %v1117_v23  ;;  %2737 = vmatpush1.msk.msra.mxu0 %vm365_vm1, %v1118_v25 }
 0x1e9   :  { %2734 = vmatpush1.msk.msra.mxu1 %vm365_vm1, %v1116_v28  ;;  %2738 = vmatmul.mubr.msk.f32.vlgmr.msra.gmra.mrb[2].mxu0 %vm361_vm2, %v1098_v20 }
 0x1ea   :  { %2739 = vmatprep.subr.msk.mxu0 %vm365_vm1, %v3404_v9  ;;  %v1598_v29 = vpop.permute.xlu1 %1597  ;;  %2742 = vmatprep.subr.msk.mxu1 %vm365_vm1, %v3409_v11  ;;  %v1606_v31 = vpop.permute.xlu0 %1605 }
 0x1eb   :  { %2740 = vmatpush1.msk.msra.mxu0 %vm365_vm1, %v3385_v57  ;;  %2735 = vmatmul.mubr.msk.f32.vlgmr.msra.gmra.mrb[2].mxu1 %vm361_vm2, %v1098_v20  ;;  %v1609_v57 = vsel %vm1607_vm6, %v1596_v7, %v1598_v29 }
 0x1ec   :  { %2743 = vmatpush1.msk.msra.mxu1 %vm365_vm1, %v3413_v16  ;;  %2745 = vmatprep.subr.msk.mxu0 %vm365_vm1, %v3416_v17  ;;  %v1608_v16 = vsel %vm1607_vm6, %v1594_v26, %v1596_v7 }
 0x1ed   :  { %1435 = vmatprep.mubr.f32.mxu0 %v3136_v3  ;;  %1506 = vmatprep.mubr.f32.mxu1 %v3136_v3 }
 0x1ee   :  { %2741 = vmatmul.mubr.msk.f32.vlgmr.msra.gmra.mrb[0].mxu0 %vm361_vm2, %v1355_v32  ;;  %v1604_v9 = vpop.permute.xlu1 %1603  ;;  %v1602_v11 = vpop.permute.xlu0 %1601 }
 0x1ef   :  { %2746 = vmatpush1.msk.msra.mxu0 %vm365_vm1, %v3419_v18  ;;  %1577 = vmatprep.mubr.f32.mxu0 %v3136_v3  ;;  %v1613_v33 = vsel %vm1607_vm6, %v1604_v9, %v1606_v31  ;;  %v1591_v18 = vld [vmem:[#allocation13 + $0x14] sm:$0xf]  ;;  %v1612_v37 = vsel %vm1607_vm6, %v1602_v11, %v1604_v9 }
 0x1f0   :  { %2748 = vmatprep.subr.msk.mxu0 %vm365_vm1, %v1609_v57 }
 0x1f2   :  { %2747 = vmatmul.mubr.msk.f32.vlgmr.msra.gmra.mrb[2].mxu0 %vm361_vm2, %v1355_v32  ;;  %v1600_v17 = vpop.permute.xlu1 %1599  ;;  %v1855_v36 = vpop.permute.xlu0 %1854 }
 0x1f3   :  { %2749 = vmatpush1.msk.msra.mxu0 %vm365_vm1, %v1608_v16  ;;  %v1610_v34 = vsel %vm1607_vm6, %v1598_v29, %v1600_v17  ;;  %v1611_v35 = vsel %vm1607_vm6, %v1600_v17, %v1602_v11  ;;  %1693 = vmatprep.mubr.f32.mxu0 %v3136_v3 }
 0x1f4   :  { %2754 = vmatprep.subr.msk.mxu0 %vm365_vm1, %v1613_v33  ;;  %2751 = vmatprep.subr.msk.mxu1 %vm365_vm1, %v1611_v35 }
 0x1f5   :  { %2744 = vmatmul.mubr.msk.f32.vlgmr.msra.gmra.mrb[2].mxu1 %vm361_vm2, %v1355_v32 }
 0x1f6   :  { %2750 = vmatmul.mubr.msk.f32.vlgmr.msra.gmra.mrb[0].mxu0 %vm361_vm2, %v1591_v18  ;;  %2752 = vmatpush1.msk.msra.mxu1 %vm365_vm1, %v1610_v34  ;;  %v1853_v38 = vpop.permute.xlu1 %1852  ;;  %v1861_v40 = vpop.permute.xlu0 %1860 }
 0x1f7   :  { %2755 = vmatpush1.msk.msra.mxu0 %vm365_vm1, %v1612_v37  ;;  %v1866_v39 = vsel %vm1864_vm7, %v1853_v38, %v1855_v36  ;;  %1835 = vmatprep.mubr.f32.mxu0 %v3136_v3 }
 0x1f8   :  { %2757 = vmatprep.subr.msk.mxu0 %vm365_vm1, %v1866_v39  ;;  %1764 = vmatprep.mubr.f32.mxu1 %v3136_v3 }
 0x1fa   :  { %v1851_v42 = vpop.permute.xlu1 %1850  ;;  %2756 = vmatmul.mubr.msk.f32.vlgmr.msra.gmra.mrb[2].mxu0 %vm361_vm2, %v1591_v18  ;;  %v1857_v44 = vpop.permute.xlu0 %1856 }
 0x1fb   :  { %v1865_v43 = vsel %vm1864_vm7, %v1851_v42, %v1853_v38  ;;  %1950 = vmatprep.mubr.f32.mxu0 %v3136_v3  ;;  %v1867_v53 = vsel %vm1864_vm7, %v1855_v36, %v1857_v44 }
 0x1fc   :  { %2758 = vmatpush1.msk.msra.mxu0 %vm365_vm1, %v1865_v43 }
 0x1fd   :  { %2753 = vmatmul.mubr.msk.f32.vlgmr.msra.gmra.mrb[2].mxu1 %vm361_vm2, %v1591_v18 }
 0x1fe   :  { %v1863_v46 = vpop.permute.xlu1 %1862  ;;  %2759 = vmatmul.mubr.msk.f32.vlgmr.msra.gmra.mrb[0].mxu0 %vm361_vm2, %v1849_v45  ;;  %2021 = vmatprep.mubr.f32.mxu1 %v3136_v3  ;;  %v2110_v48 = vpop.permute.xlu0 %2109 }
 0x1ff   :  { %v1870_v47 = vsel %vm1864_vm7, %v1861_v40, %v1863_v46  ;;  %2092 = vmatprep.mubr.f32.mxu0 %v3136_v3 }
 0x200   :  { %2763 = vmatprep.subr.msk.mxu0 %vm365_vm1, %v1870_v47 }
 0x202   :  { %v1859_v49 = vpop.permute.xlu1 %1858  ;;  %v2108_v52 = vpop.permute.xlu0 %2107 }
 0x203   :  { %v1868_v50 = vsel %vm1864_vm7, %v1857_v44, %v1859_v49  ;;  %v1869_v51 = vsel %vm1864_vm7, %v1859_v49, %v1861_v40  ;;  %v2122_v59 = vsel %vm2121_vm8, %v2108_v52, %v2110_v48 }
 0x204   :  { %2760 = vmatprep.subr.msk.mxu1 %vm365_vm1, %v1868_v50  ;;  %2764 = vmatpush1.msk.msra.mxu0 %vm365_vm1, %v1869_v51 }
 0x205   :  { %2761 = vmatpush1.msk.msra.mxu1 %vm365_vm1, %v1867_v53  ;;  %2765 = vmatmul.mubr.msk.f32.vlgmr.msra.gmra.mrb[2].mxu0 %vm361_vm2, %v1849_v45 }
 0x206   :  { %v2112_v54 = vpop.permute.xlu1 %2111  ;;  %2207 = vmatprep.mubr.f32.mxu0 %v3136_v3  ;;  %2762 = vmatmul.mubr.msk.f32.vlgmr.msra.gmra.mrb[2].mxu1 %vm361_vm2, %v1849_v45  ;;  %v2120_v56 = vpop.permute.xlu0 %2119 }
 0x207   :  { %v2123_v55 = vsel %vm2121_vm8, %v2110_v48, %v2112_v54  ;;  %2278 = vmatprep.mubr.f32.mxu1 %v3136_v3 }
 0x208   :  { %2766 = vmatprep.subr.msk.mxu0 %vm365_vm1, %v2123_v55 }
 0x209   :  { %2767 = vmatpush1.msk.msra.mxu0 %vm365_vm1, %v2122_v59 }
 0x20a   :  { %v2118_v60 = vpop.permute.xlu1 %2117  ;;  %2768 = vmatmul.mubr.msk.f32.vlgmr.msra.gmra.mrb[0].mxu0 %vm361_vm2, %v2106_v58  ;;  %v2116_v62 = vpop.permute.xlu0 %2115 }
 0x20b   :  { %v2127_v61 = vsel %vm2121_vm8, %v2118_v60, %v2120_v56  ;;  %2349 = vmatprep.mubr.f32.mxu0 %v3136_v3  ;;  %v2126_v63 = vsel %vm2121_vm8, %v2116_v62, %v2118_v60 }
 0x20c   :  { %2772 = vmatprep.subr.msk.mxu0 %vm365_vm1, %v2127_v61 }
 0x20d   :  { %2773 = vmatpush1.msk.msra.mxu0 %vm365_vm1, %v2126_v63 }
 0x20e   :  { %v2114_v1 = vpop.permute.xlu1 %2113  ;;  %2774 = vmatmul.mubr.msk.f32.vlgmr.msra.gmra.mrb[2].mxu0 %vm361_vm2, %v2106_v58  ;;  %v2369_v5 = vpop.permute.xlu0 %2368 }
 0x20f   :  { %v2124_v2 = vsel %vm2121_vm8, %v2112_v54, %v2114_v1  ;;  %v2125_v4 = vsel %vm2121_vm8, %v2114_v1, %v2116_v62  ;;  %2464 = vmatprep.mubr.f32.mxu0 %v3136_v3 }
 0x210   :  { %2769 = vmatprep.subr.msk.mxu1 %vm365_vm1, %v2125_v4 }
 0x211   :  { %2770 = vmatpush1.msk.msra.mxu1 %vm365_vm1, %v2124_v2 }
 0x212   :  { %v2367_v10 = vpop.permute.xlu1 %2366  ;;  %2771 = vmatmul.mubr.msk.f32.vlgmr.msra.gmra.mrb[2].mxu1 %vm361_vm2, %v2106_v58  ;;  %v2371_v21 = vpop.permute.xlu0 %2370 }
 0x213   :  { %v2380_v0 = vsel %vm2378_vm9, %v2367_v10, %v2369_v5  ;;  %2535 = vmatprep.mubr.f32.mxu1 %v3136_v3  ;;  %v2381_v6 = vsel %vm2378_vm9, %v2369_v5, %v2371_v21 }
 0x214   :  { %2775 = vmatprep.subr.msk.mxu0 %vm365_vm1, %v2380_v0 }
 0x216   :  { %v2365_v13 = vpop.permute.xlu1 %2364  ;;  %v2375_v7 = vpop.permute.xlu0 %2374 }
 0x217   :  { %v2379_v20 = vsel %vm2378_vm9, %v2365_v13, %v2367_v10 }
 0x218   :  { %2776 = vmatpush1.msk.msra.mxu0 %vm365_vm1, %v2379_v20 }
 0x219   :  { %2777 = vmatmul.mubr.msk.f32.vlgmr.msra.gmra.mrb[0].mxu0 %vm361_vm2, %v2363_v19 }
 0x21a   :  { %v2373_v22 = vpop.permute.xlu1 %2372  ;;  %2606 = vmatprep.mubr.f32.mxu0 %v3136_v3 }
 0x21b   :  { %v2382_v24 = vsel %vm2378_vm9, %v2371_v21, %v2373_v22  ;;  %v2383_v25 = vsel %vm2378_vm9, %v2373_v22, %v2375_v7 }
 0x21c   :  { %2778 = vmatprep.subr.msk.mxu1 %vm365_vm1, %v2382_v24 }
 0x21d   :  { %2779 = vmatpush1.msk.msra.mxu1 %vm365_vm1, %v2381_v6 }
 0x21e   :  { %v2377_v8 = vpop.permute.xlu1 %2376  ;;  %2780 = vmatmul.mubr.msk.f32.vlgmr.msra.gmra.mrb[2].mxu1 %vm361_vm2, %v2363_v19 }
 0x21f   :  { %v2384_v23 = vsel %vm2378_vm9, %v2375_v7, %v2377_v8 }
 0x220   :  { %2781 = vmatprep.subr.msk.mxu0 %vm365_vm1, %v2384_v23 }
 0x221   :  { %2782 = vmatpush1.msk.msra.mxu0 %vm365_vm1, %v2383_v25 }
 0x222   :  { %2783 = vmatmul.mubr.msk.f32.vlgmr.msra.gmra.mrb[2].mxu0 %vm361_vm2, %v2363_v19 }
 0x298   :  { %v693_v3 = vpop.f32.mrb[0].mxu1 }
 0x299   :  { %v695_v26 = vpop.f32.mrb[1].mxu1 }
 0x2a5   :  { %v835_v28 = vpop.f32.mrb[4].mxu1 }
 0x2a6   :  { %v837_v29 = vpop.f32.mrb[5].mxu1 }
 0x2ec   :  { %v2466_v31 = vpop.f32.mrb[0].mxu0 }
 0x2ed   :  { %v2784_v32 = vadd.f32 %v2466_v31, %v693_v3  ;;  %v2468_v9 = vpop.f32.mrb[1].mxu0 }
 0x2ee   :  { %v2785_v57 = vadd.f32 %v2468_v9, %v695_v26 }
 0x2ef   :  { %v2619_v11 = vmul.f32 %v2784_v32, %v3334_v12 }
 0x2f0   :  { %v2620_v16 = vmul.f32 %v2785_v57, %v3336_v14 }
 0x2f1   :  { %v2640_v17 = vmul.f32 %v2619_v11, %v2619_v11  ;;  %v2537_v33 = vpop.f32.mrb[2].mxu1 }
 0x2f2   :  { %v2631_v34 = vcombine.low %v2619_v11, %v2620_v16  ;;  %v2642_v35 = vmul.f32 %v2620_v16, %v2620_v16  ;;  %v2621_v36 = vmul.f32 %v2537_v33, %v3348_v27  ;;  %v2641_v18 = vadd.f32 %v2620_v16, %v2619_v11  ;;  %v2539_v37 = vpop.f32.mrb[3].mxu1 }
 0x2f3   :  { %v2622_v38 = vmul.f32 %v2539_v37, %v3338_v15 }
 0x2f4   :  { %2637 = vst [vmem:[#allocation17] sm:$0xff] %v2631_v34  ;;  %v2643_v39 = vadd.f32 %v2642_v35, %v2640_v17  ;;  %v2644_v40 = vadd.f32 %v2641_v18, %v2621_v36  ;;  %v2645_v42 = vmul.f32 %v2621_v36, %v2621_v36 }
 0x2f5   :  { %v2632_v43 = vcombine.low %v2621_v36, %v2622_v38  ;;  %v2648_v44 = vmul.f32 %v2622_v38, %v2622_v38  ;;  %v2608_v45 = vpop.f32.mrb[2].mxu0 }
 0x2f6   :  { %v2646_v12 = vadd.f32 %v2645_v42, %v2643_v39  ;;  %v2647_v46 = vadd.f32 %v2644_v40, %v2622_v38  ;;  %v2786_v14 = vadd.f32 %v2608_v45, %v835_v28  ;;  %v2610_v47 = vpop.f32.mrb[3].mxu0 }
 0x2f7   :  { %2638 = vst [vmem:[#allocation17 + $0x8] sm:$0xff] %v2632_v43  ;;  %v2787_v48 = vadd.f32 %v2610_v47, %v837_v29 }
 0x2f8   :  { %v2649_v49 = vadd.f32 %v2648_v44, %v2646_v12  ;;  %v2623_v27 = vmul.f32 %v2786_v14, %v3363_v41 }
 0x2f9   :  { %v2624_v15 = vmul.f32 %v2787_v48, %v3350_v30 }
 0x2fa   :  { %v2650_v50 = vadd.f32 %v2647_v46, %v2623_v27  ;;  %v2651_v51 = vmul.f32 %v2623_v27, %v2623_v27 }
 0x2fb   :  { %v2633_v52 = vcombine.low %v2623_v27, %v2624_v15  ;;  %v2654_v53 = vmul.f32 %v2624_v15, %v2624_v15 }
 0x2fc   :  { %v2652_v54 = vadd.f32 %v2651_v51, %v2649_v49  ;;  %v2653_v55 = vadd.f32 %v2650_v50, %v2624_v15 }
 0x2fd   :  { %2639 = vst [vmem:[#allocation17 + $0x10] sm:$0xff] %v2633_v52 }
 0x2fe   :  { %v2655_v56 = vadd.f32 %v2654_v53, %v2652_v54  ;;  %v2656_v58 = vsel %vm365_vm1, %v2653_v55, 0.0 }
 0x2ff   :  { %3076 = shalt.err (!%p3073_p4)
}
 0x300   :  { %s3077_s21 = scalar_lea.hbm %s3670_s9, 384 }
 0x301   :  { %p3078_p5 = scmp.ne.s32.totalorder %s3670_s9, %s3077_s21  ;;  %p3081_p6 = scmp.lt.u32.totalorder %s3077_s21, %s3670_s9 }
 0x303   :  { %p3083_p7 = pnand %p3081_p6, %p3078_p5 }
 0x305   :  { %3086 = shalt.err (!%p3083_p7)
}
 0x306   :  { %2669 = dma.vmem_to_hbm [thread:$0]  %s2667_s18, 384, %s3670_s9, [#allocation4]   ;;  %2658 = vst [vmem:[#allocation18] sm:$0xff] %v2656_v58  ;;  %v2657_v30 = vsel %vm365_vm1, %v2655_v56, 0.0 }
 0x307   :  { %2659 = vst [vmem:[#allocation18 + $0x8] sm:$0xff] %v2657_v30  ;;  %s3087_s2 = scalar_lea.vmem %s2676_s14, 256  ;;  %p3092_p9 = scmp.lt.s32.totalorder %s2676_s14, %s2676_s14 }
 0x308   :  { %p3088_p8 = scmp.ne.s32.totalorder %s2676_s14, %s3087_s2  ;;  %p3093_p10 = scmp.lt.s32.totalorder %s3087_s2, %s3087_s2 }
 0x30a   :  { %p3094_p11 = por %p3093_p10, %p3092_p9 }
 0x30c   :  { %p3095_p12 = pnand %p3094_p11, %p3088_p8 }
 0x30e   :  { %3098 = shalt.err (!%p3095_p12)
}
 0x30f   :  { %s3099_s11 = scalar_lea.hbm %s3671_s10, 256 }
 0x310   :  { %p3100_p13 = scmp.ne.s32.totalorder %s3671_s10, %s3099_s11  ;;  %p3103_p0 = scmp.lt.u32.totalorder %s3099_s11, %s3671_s10 }
 0x312   :  { %p3105_p1 = pnand %p3103_p0, %p3100_p13 }
 0x314   :  { %3108 = shalt.err (!%p3105_p1)
}
 0x315   :  { %s3146_s8 = smov 128   ;;  %s3147_s26 = smov 8  }
 0x316   :  { %2681 = dma.vmem_to_hbm [thread:$0]  %s2676_s14, 256, %s3671_s10, [#allocation19], %s3146_s8, %s3146_s8, %s3147_s26  }
 0x317   :  { %3119 = dma.done.wait [#allocation4], 384  }
 0x318   :  { %3120 = vsyncadd [#allocation4], 4294966912 }
 0x319   :  { %3121 = dma.done.wait [#allocation19], 256  }
 0x31a   :  { %3122 = vsyncadd [#allocation19], 4294967040 }
 0x31b   :  { %2688 = vsyncpa [#allocation3], 1 }
 0x31c   :  { %2689 = vsyncpa [#allocation6], 1 }
 0x31d   :  { %2690 = vsyncpa [#allocation9], 1 }
 0x31e   :  { %2691 = vsyncpa [#allocation12], 1 }
 0x31f   :  { %2692 = vsyncpa [#allocation15], 1 }
 0x320   :  { %2693 = vsyncpa [#allocation4], 1 }
 0x321   :  { %2694 = vsyncpa [#allocation19], 1 }

</bundles_post_ra>
